<compile_context>
chip_gen: v5e
topology: v5e:2x2
jax: 0.10.0
libtpu: 0.0.40
codegen_flags: <defaults>
</compile_context>

<pallas_src>
import functools
import math

import jax
import jax.numpy as jnp
from jax.experimental import pallas as pl
from jax.experimental.pallas import tpu as pltpu


# ----------------------------------------------------------------------------
# Config
# ----------------------------------------------------------------------------

VOCAB = 100
HIDDEN = 32
LAYERS = 2
HEADS = 2
HEAD_DIM = HIDDEN // HEADS
INTERMEDIATE = 64
MAX_POS = 32
TYPE_VOCAB = 2
NUM_LABELS = 2
LN_EPS = 1e-12

# Generation-aware VMEM budget: 3/4 of physical capacity (96 MiB on v5e/v6e's
# 128 MiB, 48 MiB on v7x's 64 MiB).
def _vmem_limit_bytes():
    cap = 128 * 1024 * 1024
    try:
        info = pltpu.get_tpu_info()
        cap = int(getattr(info, "vmem_capacity_bytes", cap))
    except Exception:
        pass
    return int(cap * 3 // 4)


VMEM_LIMIT = _vmem_limit_bytes()


def _tile(dim, target):
    """Pick a tile that evenly divides `dim`; fall back to the full extent."""
    return target if (dim >= target and dim % target == 0) else dim


# ----------------------------------------------------------------------------
# Pallas kernels
# ----------------------------------------------------------------------------

def _attn_block_kernel(x_ref, wq_ref, wk_ref, wv_ref, bq_ref, bk_ref, bv_ref,
                       wo_ref, bo_ref, g_ref, beta_ref, o_ref, acc_ref,
                       *, scale, eps):
    """Fused per-(batch, head) attention block.

    Grid = (B, heads).  For each head: project x -> q,k,v with the per-head
    weight tile (DMA'd via BlockSpec, no lane slicing), run softmax attention,
    project the context through the per-head slice of W_o and accumulate the
    (S, H) partial output in a VMEM f32 scratch.  On the last head: add the
    output bias + residual and apply LayerNorm.
    """
    h_idx = pl.program_id(1)

    @pl.when(h_idx == 0)
    def _():
        acc_ref[...] = jnp.zeros_like(acc_ref)

    x = x_ref[0]                                                   # (S, H) bf16
    # bf16 MXU matmuls, f32 accumulation.
    q = jnp.dot(x, wq_ref[0], preferred_element_type=jnp.float32) + bq_ref[0]
    k = jnp.dot(x, wk_ref[0], preferred_element_type=jnp.float32) + bk_ref[0]
    v = jnp.dot(x, wv_ref[0], preferred_element_type=jnp.float32) + bv_ref[0]

    qs = (q * scale).astype(jnp.bfloat16)
    kb = k.astype(jnp.bfloat16)
    # Contract over head_dim directly (NT matmul, no explicit transpose).
    s = jax.lax.dot_general(qs, kb, (((1,), (1,)), ((), ())),
                            preferred_element_type=jnp.float32)    # (S, S)
    # TODO(synk): no attention mask (assumes full-length sequences); for long
    # sequences tile over KV (flash-style) instead of the full (S, S) matrix.
    m = jnp.max(s, axis=-1, keepdims=True)
    p = jnp.exp(s - m)
    p = p * pl.reciprocal(jnp.sum(p, axis=-1, keepdims=True), approx=True)
    ctx = jnp.dot(p.astype(jnp.bfloat16), v.astype(jnp.bfloat16),
                  preferred_element_type=jnp.float32)              # (S, D)
    # Per-head slice of the output projection; accumulate across heads.
    acc_ref[...] += jnp.dot(ctx.astype(jnp.bfloat16), wo_ref[0],
                            preferred_element_type=jnp.float32)    # (S, H)

    @pl.when(h_idx == pl.num_programs(1) - 1)
    def _():
        y = acc_ref[...] + bo_ref[...] + x_ref[0].astype(jnp.float32)
        mu = jnp.mean(y, axis=-1, keepdims=True)
        var = jnp.mean(jnp.square(y - mu), axis=-1, keepdims=True)
        xhat = (y - mu) * jax.lax.rsqrt(var + eps)
        o_ref[0] = (xhat * g_ref[...] + beta_ref[...]).astype(o_ref.dtype)


def _ffn_kernel(x_ref, wi_ref, bi_ref, wf_ref, bf_ref, g_ref, beta_ref,
                o_ref, *, eps):
    """Fused FFN: o = LN(GELU(x @ wi + bi) @ wf + bf + x) * g + beta.

    The (tm, INTERMEDIATE) activation tile stays resident in VMEM — no HBM
    round trip between the up- and down-projection.
    """
    x = x_ref[...]                                                 # (tm,H) bf16
    inter = jnp.dot(x, wi_ref[...], preferred_element_type=jnp.float32)
    inter = inter + bi_ref[...]
    # TODO(synk): HF BERT uses exact erf-GELU; tanh approximation here.
    inter = jax.nn.gelu(inter, approximate=True)
    y = jnp.dot(inter.astype(jnp.bfloat16), wf_ref[...],
                preferred_element_type=jnp.float32)
    y = y + bf_ref[...] + x.astype(jnp.float32)
    mu = jnp.mean(y, axis=-1, keepdims=True)
    var = jnp.mean(jnp.square(y - mu), axis=-1, keepdims=True)
    xhat = (y - mu) * jax.lax.rsqrt(var + eps)
    o_ref[...] = (xhat * g_ref[...] + beta_ref[...]).astype(o_ref.dtype)


def _ln_kernel(x_ref, g_ref, b_ref, o_ref, *, eps):
    """o = LayerNorm(x) * gamma + beta over the last axis."""
    x = x_ref[...].astype(jnp.float32)
    mu = jnp.mean(x, axis=-1, keepdims=True)
    var = jnp.mean(jnp.square(x - mu), axis=-1, keepdims=True)
    xhat = (x - mu) * jax.lax.rsqrt(var + eps)
    o_ref[...] = (xhat * g_ref[...] + b_ref[...]).astype(o_ref.dtype)


def _head_kernel(cls_ref, pw_ref, pb_ref, cw_ref, cb_ref, lab_ref,
                 loss_ref, logits_ref):
    """Fused pooler(dense+tanh) + classifier dense + mean softmax CE loss."""
    cls_tok = cls_ref[...].astype(jnp.float32)                     # (B, H)
    pooled = jnp.tanh(
        jnp.dot(cls_tok, pw_ref[...], preferred_element_type=jnp.float32)
        + pb_ref[...])
    logits = (jnp.dot(pooled, cw_ref[...], preferred_element_type=jnp.float32)
              + cb_ref[...])                                       # (B, C)
    b, c = logits.shape
    m = jnp.max(logits, axis=-1, keepdims=True)
    lse = m + jnp.log(jnp.sum(jnp.exp(logits - m), axis=-1, keepdims=True))
    cls_idx = jax.lax.broadcasted_iota(jnp.int32, (b, c), 1)
    picked = jnp.sum(jnp.where(cls_idx == lab_ref[...], logits, 0.0),
                     axis=-1, keepdims=True)
    nll = lse - picked                                             # (B, 1)
    loss_ref[...] = jnp.sum(nll, axis=0, keepdims=True) * (1.0 / b)
    logits_ref[...] = logits.astype(logits_ref.dtype)


# ----------------------------------------------------------------------------
# Kernel wrappers
# ----------------------------------------------------------------------------

def attention_block(x_bsh, wq, wk, wv, bq, bk, bv, wo, bo, gamma, beta):
    """x:(B,S,H) bf16 -> LN(x + MHSA(x) @ Wo + bo):(B,S,H) bf16."""
    b, s, h = x_bsh.shape
    heads, _, d = wq.shape
    return pl.pallas_call(
        functools.partial(_attn_block_kernel,
                          scale=1.0 / math.sqrt(d), eps=LN_EPS),
        grid=(b, heads),
        in_specs=[
            pl.BlockSpec((1, s, h), lambda bi, hi: (bi, 0, 0)),   # x (resident)
            pl.BlockSpec((1, h, d), lambda bi, hi: (hi, 0, 0)),   # wq[head]
            pl.BlockSpec((1, h, d), lambda bi, hi: (hi, 0, 0)),   # wk[head]
            pl.BlockSpec((1, h, d), lambda bi, hi: (hi, 0, 0)),   # wv[head]
            pl.BlockSpec((1, 1, d), lambda bi, hi: (hi, 0, 0)),   # bq[head]
            pl.BlockSpec((1, 1, d), lambda bi, hi: (hi, 0, 0)),   # bk[head]
            pl.BlockSpec((1, 1, d), lambda bi, hi: (hi, 0, 0)),   # bv[head]
            pl.BlockSpec((1, d, h), lambda bi, hi: (hi, 0, 0)),   # wo[head]
            pl.BlockSpec((1, h), lambda bi, hi: (0, 0)),          # bo
            pl.BlockSpec((1, h), lambda bi, hi: (0, 0)),          # ln gamma
            pl.BlockSpec((1, h), lambda bi, hi: (0, 0)),          # ln beta
        ],
        out_specs=pl.BlockSpec((1, s, h), lambda bi, hi: (bi, 0, 0)),
        out_shape=jax.ShapeDtypeStruct((b, s, h), jnp.bfloat16),
        scratch_shapes=[pltpu.VMEM((s, h), jnp.float32)],
        compiler_params=pltpu.CompilerParams(
            dimension_semantics=("parallel", "arbitrary"),
            vmem_limit_bytes=VMEM_LIMIT),
    )(x_bsh, wq, wk, wv, bq, bk, bv, wo,
      bo.reshape(1, h), gamma.reshape(1, h), beta.reshape(1, h))


def ffn_block(x, w_in, b_in, w_out, b_out, gamma, beta, tm=512):
    """x:(M,H) bf16 -> LN(x + GELU(x@w_in+b_in)@w_out+b_out):(M,H) bf16."""
    m, h = x.shape
    inter = w_in.shape[1]
    tm = _tile(m, tm)
    return pl.pallas_call(
        functools.partial(_ffn_kernel, eps=LN_EPS),
        grid=(m // tm,),
        in_specs=[pl.BlockSpec((tm, h), lambda i: (i, 0)),
                  pl.BlockSpec((h, inter), lambda i: (0, 0)),
                  pl.BlockSpec((1, inter), lambda i: (0, 0)),
                  pl.BlockSpec((inter, h), lambda i: (0, 0)),
                  pl.BlockSpec((1, h), lambda i: (0, 0)),
                  pl.BlockSpec((1, h), lambda i: (0, 0)),
                  pl.BlockSpec((1, h), lambda i: (0, 0))],
        out_specs=pl.BlockSpec((tm, h), lambda i: (i, 0)),
        out_shape=jax.ShapeDtypeStruct((m, h), jnp.bfloat16),
        compiler_params=pltpu.CompilerParams(
            dimension_semantics=("parallel",),
            vmem_limit_bytes=VMEM_LIMIT),
    )(x, w_in, b_in.reshape(1, inter), w_out, b_out.reshape(1, h),
      gamma.reshape(1, h), beta.reshape(1, h))


def layer_norm(x, gamma, beta, eps=LN_EPS, tm=512):
    m, h = x.shape
    tm = _tile(m, tm)
    return pl.pallas_call(
        functools.partial(_ln_kernel, eps=eps),
        grid=(m // tm,),
        in_specs=[pl.BlockSpec((tm, h), lambda i: (i, 0)),
                  pl.BlockSpec((1, h), lambda i: (0, 0)),
                  pl.BlockSpec((1, h), lambda i: (0, 0))],
        out_specs=pl.BlockSpec((tm, h), lambda i: (i, 0)),
        out_shape=jax.ShapeDtypeStruct((m, h), jnp.bfloat16),
        compiler_params=pltpu.CompilerParams(
            dimension_semantics=("parallel",),
            vmem_limit_bytes=VMEM_LIMIT),
    )(x, gamma.reshape(1, h), beta.reshape(1, h))


def classifier_head(cls_tok, pw, pb, cw, cb, label):
    b, h = cls_tok.shape
    c = cw.shape[1]
    loss, logits = pl.pallas_call(
        _head_kernel,
        out_shape=(jax.ShapeDtypeStruct((1, 1), jnp.float32),
                   jax.ShapeDtypeStruct((b, c), jnp.float32)),
    )(cls_tok, pw, pb.reshape(1, h), cw, cb.reshape(1, c),
      label.reshape(b, 1).astype(jnp.int32))
    return loss[0, 0], logits


# ----------------------------------------------------------------------------
# Parameter init (deterministic; weights stored bf16, biases/LN params f32)
# ----------------------------------------------------------------------------

def init_params(key):
    def norm_f32(k, shape):
        return 0.02 * jax.random.normal(k, shape, jnp.float32)

    def norm_bf16(k, shape):
        return norm_f32(k, shape).astype(jnp.bfloat16)

    def split_heads_qkv(w):   # (H, H) -> (heads, H, head_dim)
        return jnp.transpose(w.reshape(HIDDEN, HEADS, HEAD_DIM), (1, 0, 2))

    keys = iter(jax.random.split(key, 128))
    p = {
        "word_emb": norm_f32(next(keys), (VOCAB, HIDDEN)),
        "pos_emb": norm_f32(next(keys), (MAX_POS, HIDDEN)),
        "type_emb": norm_f32(next(keys), (TYPE_VOCAB, HIDDEN)),
        "emb_ln_g": jnp.ones((HIDDEN,), jnp.float32),
        "emb_ln_b": jnp.zeros((HIDDEN,), jnp.float32),
        "layers": [],
        "pooler_w": norm_f32(next(keys), (HIDDEN, HIDDEN)),
        "pooler_b": jnp.zeros((HIDDEN,), jnp.float32),
        "cls_w": norm_f32(next(keys), (HIDDEN, NUM_LABELS)),
        "cls_b": jnp.zeros((NUM_LABELS,), jnp.float32),
    }
    for _ in range(LAYERS):
        wq = norm_f32(next(keys), (HIDDEN, HIDDEN))
        wk = norm_f32(next(keys), (HIDDEN, HIDDEN))
        wv = norm_f32(next(keys), (HIDDEN, HIDDEN))
        wo = norm_f32(next(keys), (HIDDEN, HIDDEN))
        lp = {
            # Head-major layouts so each head's tile is a contiguous DMA block
            # (no lane-axis slicing inside the kernel).
            "wq": split_heads_qkv(wq).astype(jnp.bfloat16),   # (heads, H, D)
            "wk": split_heads_qkv(wk).astype(jnp.bfloat16),
            "wv": split_heads_qkv(wv).astype(jnp.bfloat16),
            "bq": jnp.zeros((HEADS, 1, HEAD_DIM), jnp.float32),
            "bk": jnp.zeros((HEADS, 1, HEAD_DIM), jnp.float32),
            "bv": jnp.zeros((HEADS, 1, HEAD_DIM), jnp.float32),
            "wo": wo.reshape(HEADS, HEAD_DIM, HIDDEN).astype(jnp.bfloat16),
            "bo": jnp.zeros((HIDDEN,), jnp.float32),
            "attn_ln_g": jnp.ones((HIDDEN,), jnp.float32),
            "attn_ln_b": jnp.zeros((HIDDEN,), jnp.float32),
            "wi": norm_bf16(next(keys), (HIDDEN, INTERMEDIATE)),
            "bi": jnp.zeros((INTERMEDIATE,), jnp.float32),
            "wf": norm_bf16(next(keys), (INTERMEDIATE, HIDDEN)),
            "bf": jnp.zeros((HIDDEN,), jnp.float32),
            "ffn_ln_g": jnp.ones((HIDDEN,), jnp.float32),
            "ffn_ln_b": jnp.zeros((HIDDEN,), jnp.float32),
        }
        p["layers"].append(lp)
    return p


# ----------------------------------------------------------------------------
# Forward pass: (loss, logits) = BERT(text, label)
# ----------------------------------------------------------------------------

def bert_forward(params, text, label):
    b, s = text.shape
    m = b * s

    # Embeddings (gather is glue JAX; the LayerNorm runs in a Pallas kernel
    # and emits bf16 activations for the encoder stack).
    # TODO(synk): token_type_ids hard-coded to segment 0.
    emb = (jnp.take(params["word_emb"], text, axis=0)
           + params["pos_emb"][:s][None, :, :]
           + params["type_emb"][0][None, None, :])                 # (B,S,H) f32
    x = layer_norm(emb.reshape(m, HIDDEN),
                   params["emb_ln_g"], params["emb_ln_b"])         # bf16
    # dropout(p=0.1) is identity at inference.

    for lp in params["layers"]:
        # 1) fused QKV + attention + output proj + residual + LayerNorm
        x = attention_block(x.reshape(b, s, HIDDEN),
                            lp["wq"], lp["wk"], lp["wv"],
                            lp["bq"], lp["bk"], lp["bv"],
                            lp["wo"], lp["bo"],
                            lp["attn_ln_g"], lp["attn_ln_b"])      # (B,S,H) bf16
        # 2) fused FFN (up-proj + GELU + down-proj + residual + LayerNorm)
        x = ffn_block(x.reshape(m, HIDDEN), lp["wi"], lp["bi"],
                      lp["wf"], lp["bf"],
                      lp["ffn_ln_g"], lp["ffn_ln_b"])              # (M,H) bf16

    # Fused pooler (CLS dense + tanh) + classifier + cross-entropy.
    cls_tok = x.reshape(b, s, HIDDEN)[:, 0, :]                     # (B, H) bf16
    loss, logits = classifier_head(cls_tok, params["pooler_w"],
                                   params["pooler_b"], params["cls_w"],
                                   params["cls_b"], label)
    return loss, logits


if __name__ == "__main__":
    key = jax.random.PRNGKey(0)
    k_param, k_text, k_label = jax.random.split(key, 3)

    params = init_params(k_param)

    B, S = 2, 8
    text = jax.random.randint(k_text, (B, S), 0, VOCAB, dtype=jnp.int32)
    label = jax.random.randint(k_label, (B,), 0, NUM_LABELS, dtype=jnp.int32)

    loss, text_fea = jax.jit(bert_forward)(params, text, label)
    jax.block_until_ready((loss, text_fea))

    assert loss.shape == () and text_fea.shape == (B, NUM_LABELS)
    assert jnp.isfinite(loss)
    print("KERNEL_OK")
</pallas_src>

<mosaic_0001>
module attributes {stable_mosaic.version = 11 : i64} {
  func.func @_ln_kernel(%arg0: i32, %arg1: memref<16x32xf32, #tpu.memory_space<vmem>>, %arg2: memref<1x32xf32, #tpu.memory_space<vmem>>, %arg3: memref<1x32xf32, #tpu.memory_space<vmem>>, %arg4: memref<16x32xbf16, #tpu.memory_space<vmem>>) attributes {dimension_semantics = [#tpu.dimension_semantics<parallel>], iteration_bounds = array<i64: 1>, scalar_prefetch = 0 : i64, scratch_operands = 0 : i64, tpu.core_type = #tpu.core_type<tc>, window_params = [{transform_indices = @transform_0, window_bounds = array<i64: 16, 32>}, {pipeline_mode = #tpu.pipeline_mode<synchronous>, transform_indices = @transform_1, window_bounds = array<i64: 1, 32>}, {pipeline_mode = #tpu.pipeline_mode<synchronous>, transform_indices = @transform_2, window_bounds = array<i64: 1, 32>}, {transform_indices = @transform_3, window_bounds = array<i64: 16, 32>}]} {
    %c0 = arith.constant 0 : index
    %c0_0 = arith.constant 0 : index
    %0 = vector.load %arg1[%c0, %c0_0] : memref<16x32xf32, #tpu.memory_space<vmem>>, vector<16x32xf32>
    %cst = arith.constant dense<0.000000e+00> : vector<16xf32>
    %1 = vector.multi_reduction <add>, %0, %cst [1] : vector<16x32xf32> to vector<16xf32>
    %2 = vector.shape_cast %1 : vector<16xf32> to vector<16x1xf32>
    %cst_1 = arith.constant 3.200000e+01 : f32
    %3 = vector.broadcast %cst_1 : f32 to vector<16x1xf32>
    %4 = arith.divf %2, %3 : vector<16x1xf32>
    %5 = vector.broadcast %4 : vector<16x1xf32> to vector<16x32xf32>
    %6 = arith.subf %0, %5 : vector<16x32xf32>
    %7 = arith.mulf %6, %6 : vector<16x32xf32>
    %cst_2 = arith.constant dense<0.000000e+00> : vector<16xf32>
    %8 = vector.multi_reduction <add>, %7, %cst_2 [1] : vector<16x32xf32> to vector<16xf32>
    %9 = vector.shape_cast %8 : vector<16xf32> to vector<16x1xf32>
    %cst_3 = arith.constant 3.200000e+01 : f32
    %10 = vector.broadcast %cst_3 : f32 to vector<16x1xf32>
    %11 = arith.divf %9, %10 : vector<16x1xf32>
    %12 = vector.broadcast %4 : vector<16x1xf32> to vector<16x32xf32>
    %13 = arith.subf %0, %12 : vector<16x32xf32>
    %cst_4 = arith.constant 9.99999996E-13 : f32
    %14 = vector.broadcast %cst_4 : f32 to vector<16x1xf32>
    %15 = arith.addf %11, %14 : vector<16x1xf32>
    %16 = math.rsqrt %15 : vector<16x1xf32>
    %17 = vector.broadcast %16 : vector<16x1xf32> to vector<16x32xf32>
    %18 = arith.mulf %13, %17 : vector<16x32xf32>
    %c0_5 = arith.constant 0 : index
    %c0_6 = arith.constant 0 : index
    %19 = vector.load %arg2[%c0_5, %c0_6] : memref<1x32xf32, #tpu.memory_space<vmem>>, vector<1x32xf32>
    %20 = vector.broadcast %19 : vector<1x32xf32> to vector<16x32xf32>
    %21 = arith.mulf %18, %20 : vector<16x32xf32>
    %c0_7 = arith.constant 0 : index
    %c0_8 = arith.constant 0 : index
    %22 = vector.load %arg3[%c0_7, %c0_8] : memref<1x32xf32, #tpu.memory_space<vmem>>, vector<1x32xf32>
    %23 = vector.broadcast %22 : vector<1x32xf32> to vector<16x32xf32>
    %24 = arith.addf %21, %23 : vector<16x32xf32>
    %25 = arith.truncf %24 : vector<16x32xf32> to vector<16x32xbf16>
    %c0_9 = arith.constant 0 : index
    %c0_10 = arith.constant 0 : index
    %26 = vector.load %arg4[%c0_9, %c0_10] : memref<16x32xbf16, #tpu.memory_space<vmem>>, vector<16x32xbf16>
    tpu.vector_store %arg4[%c0_9, %c0_10], %25 {strides = array<i32>} : memref<16x32xbf16, #tpu.memory_space<vmem>>, vector<16x32xbf16>,
    return
  }
  func.func @transform_0(%arg0: i32) -> (i32, i32) {
    %c0_i32 = arith.constant 0 : i32
    %c0_i32_0 = arith.constant 0 : i32
    return %arg0, %c0_i32 : i32, i32
  }
  func.func @transform_1(%arg0: i32) -> (i32, i32) {
    %c0_i32 = arith.constant 0 : i32
    %c0_i32_0 = arith.constant 0 : i32
    %c0_i32_1 = arith.constant 0 : i32
    return %c0_i32, %c0_i32_0 : i32, i32
  }
  func.func @transform_2(%arg0: i32) -> (i32, i32) {
    %c0_i32 = arith.constant 0 : i32
    %c0_i32_0 = arith.constant 0 : i32
    %c0_i32_1 = arith.constant 0 : i32
    return %c0_i32, %c0_i32_0 : i32, i32
  }
  func.func @transform_3(%arg0: i32) -> (i32, i32) {
    %c0_i32 = arith.constant 0 : i32
    %c0_i32_0 = arith.constant 0 : i32
    return %arg0, %c0_i32 : i32, i32
  }
}

module attributes {stable_mosaic.version = 11 : i64} {
  func.func @_attn_block_kernel(%arg0: i32, %arg1: i32, %arg2: memref<1x8x32xbf16, #tpu.memory_space<vmem>>, %arg3: memref<1x32x16xbf16, #tpu.memory_space<vmem>>, %arg4: memref<1x32x16xbf16, #tpu.memory_space<vmem>>, %arg5: memref<1x32x16xbf16, #tpu.memory_space<vmem>>, %arg6: memref<1x1x16xf32, #tpu.memory_space<vmem>>, %arg7: memref<1x1x16xf32, #tpu.memory_space<vmem>>, %arg8: memref<1x1x16xf32, #tpu.memory_space<vmem>>, %arg9: memref<1x16x32xbf16, #tpu.memory_space<vmem>>, %arg10: memref<1x32xf32, #tpu.memory_space<vmem>>, %arg11: memref<1x32xf32, #tpu.memory_space<vmem>>, %arg12: memref<1x32xf32, #tpu.memory_space<vmem>>, %arg13: memref<1x8x32xbf16, #tpu.memory_space<vmem>>, %arg14: memref<8x32xf32, #tpu.memory_space<vmem>>) attributes {dimension_semantics = [#tpu.dimension_semantics<parallel>, #tpu.dimension_semantics<arbitrary>], iteration_bounds = array<i64: 2, 2>, scalar_prefetch = 0 : i64, scratch_operands = 1 : i64, tpu.core_type = #tpu.core_type<tc>, window_params = [{transform_indices = @transform_0, window_bounds = array<i64: 1, 8, 32>}, {transform_indices = @transform_1, window_bounds = array<i64: 1, 32, 16>}, {transform_indices = @transform_2, window_bounds = array<i64: 1, 32, 16>}, {transform_indices = @transform_3, window_bounds = array<i64: 1, 32, 16>}, {transform_indices = @transform_4, window_bounds = array<i64: 1, 1, 16>}, {transform_indices = @transform_5, window_bounds = array<i64: 1, 1, 16>}, {transform_indices = @transform_6, window_bounds = array<i64: 1, 1, 16>}, {transform_indices = @transform_7, window_bounds = array<i64: 1, 16, 32>}, {pipeline_mode = #tpu.pipeline_mode<synchronous>, transform_indices = @transform_8, window_bounds = array<i64: 1, 32>}, {pipeline_mode = #tpu.pipeline_mode<synchronous>, transform_indices = @transform_9, window_bounds = array<i64: 1, 32>}, {pipeline_mode = #tpu.pipeline_mode<synchronous>, transform_indices = @transform_10, window_bounds = array<i64: 1, 32>}, {transform_indices = @transform_11, window_bounds = array<i64: 1, 8, 32>}]} {
    %c0_i32 = arith.constant 0 : i32
    %0 = arith.cmpi eq, %arg1, %c0_i32 : i32
    %1 = arith.extui %0 : i1 to i32
    %c0_i32_0 = arith.constant 0 : i32
    %2 = arith.cmpi ne, %1, %c0_i32_0 : i32
    scf.if %2 {
      %cst_37 = arith.constant 0.000000e+00 : f32
      %54 = vector.broadcast %cst_37 : f32 to vector<8x32xf32>
      %c0_38 = arith.constant 0 : index
      %c0_39 = arith.constant 0 : index
      %55 = vector.load %arg14[%c0_38, %c0_39] : memref<8x32xf32, #tpu.memory_space<vmem>>, vector<8x32xf32>
      tpu.vector_store %arg14[%c0_38, %c0_39], %54 {strides = array<i32>} : memref<8x32xf32, #tpu.memory_space<vmem>>, vector<8x32xf32>,
    } else {
    }
    %c0 = arith.constant 0 : index
    %c0_1 = arith.constant 0 : index
    %c0_2 = arith.constant 0 : index
    %3 = vector.load %arg2[%c0, %c0_1, %c0_2] : memref<1x8x32xbf16, #tpu.memory_space<vmem>>, vector<1x8x32xbf16>
    %4 = vector.shape_cast %3 : vector<1x8x32xbf16> to vector<8x32xbf16>
    %c0_3 = arith.constant 0 : index
    %c0_4 = arith.constant 0 : index
    %c0_5 = arith.constant 0 : index
    %5 = vector.load %arg3[%c0_3, %c0_4, %c0_5] : memref<1x32x16xbf16, #tpu.memory_space<vmem>>, vector<1x32x16xbf16>
    %6 = vector.shape_cast %5 : vector<1x32x16xbf16> to vector<32x16xbf16>
    %cst = arith.constant dense<0.000000e+00> : vector<8x16xf32>
    %7 = tpu.matmul %4, %6, %cst {dimension_numbers = #tpu.dot_dimension_numbers<[1], [0], [0], [1], [0, 0, 1, 1], [], []>} : vector<8x32xbf16>, vector<32x16xbf16>, vector<8x16xf32> -> vector<8x16xf32>
    %c0_6 = arith.constant 0 : index
    %c0_7 = arith.constant 0 : index
    %c0_8 = arith.constant 0 : index
    %8 = vector.load %arg6[%c0_6, %c0_7, %c0_8] : memref<1x1x16xf32, #tpu.memory_space<vmem>>, vector<1x1x16xf32>
    %9 = vector.shape_cast %8 : vector<1x1x16xf32> to vector<1x16xf32>
    %10 = vector.broadcast %9 : vector<1x16xf32> to vector<8x16xf32>
    %11 = arith.addf %7, %10 : vector<8x16xf32>
    %c0_9 = arith.constant 0 : index
    %c0_10 = arith.constant 0 : index
    %c0_11 = arith.constant 0 : index
    %12 = vector.load %arg4[%c0_9, %c0_10, %c0_11] : memref<1x32x16xbf16, #tpu.memory_space<vmem>>, vector<1x32x16xbf16>
    %13 = vector.shape_cast %12 : vector<1x32x16xbf16> to vector<32x16xbf16>
    %cst_12 = arith.constant dense<0.000000e+00> : vector<8x16xf32>
    %14 = tpu.matmul %4, %13, %cst_12 {dimension_numbers = #tpu.dot_dimension_numbers<[1], [0], [0], [1], [0, 0, 1, 1], [], []>} : vector<8x32xbf16>, vector<32x16xbf16>, vector<8x16xf32> -> vector<8x16xf32>
    %c0_13 = arith.constant 0 : index
    %c0_14 = arith.constant 0 : index
    %c0_15 = arith.constant 0 : index
    %15 = vector.load %arg7[%c0_13, %c0_14, %c0_15] : memref<1x1x16xf32, #tpu.memory_space<vmem>>, vector<1x1x16xf32>
    %16 = vector.shape_cast %15 : vector<1x1x16xf32> to vector<1x16xf32>
    %17 = vector.broadcast %16 : vector<1x16xf32> to vector<8x16xf32>
    %18 = arith.addf %14, %17 : vector<8x16xf32>
    %c0_16 = arith.constant 0 : index
    %c0_17 = arith.constant 0 : index
    %c0_18 = arith.constant 0 : index
    %19 = vector.load %arg5[%c0_16, %c0_17, %c0_18] : memref<1x32x16xbf16, #tpu.memory_space<vmem>>, vector<1x32x16xbf16>
    %20 = vector.shape_cast %19 : vector<1x32x16xbf16> to vector<32x16xbf16>
    %cst_19 = arith.constant dense<0.000000e+00> : vector<8x16xf32>
    %21 = tpu.matmul %4, %20, %cst_19 {dimension_numbers = #tpu.dot_dimension_numbers<[1], [0], [0], [1], [0, 0, 1, 1], [], []>} : vector<8x32xbf16>, vector<32x16xbf16>, vector<8x16xf32> -> vector<8x16xf32>
    %c0_20 = arith.constant 0 : index
    %c0_21 = arith.constant 0 : index
    %c0_22 = arith.constant 0 : index
    %22 = vector.load %arg8[%c0_20, %c0_21, %c0_22] : memref<1x1x16xf32, #tpu.memory_space<vmem>>, vector<1x1x16xf32>
    %23 = vector.shape_cast %22 : vector<1x1x16xf32> to vector<1x16xf32>
    %24 = vector.broadcast %23 : vector<1x16xf32> to vector<8x16xf32>
    %25 = arith.addf %21, %24 : vector<8x16xf32>
    %cst_23 = arith.constant 2.500000e-01 : f32
    %26 = vector.broadcast %cst_23 : f32 to vector<8x16xf32>
    %27 = arith.mulf %11, %26 : vector<8x16xf32>
    %28 = arith.truncf %27 : vector<8x16xf32> to vector<8x16xbf16>
    %29 = arith.truncf %18 : vector<8x16xf32> to vector<8x16xbf16>
    %cst_24 = arith.constant dense<0.000000e+00> : vector<8x8xf32>
    %30 = tpu.matmul %28, %29, %cst_24 {dimension_numbers = #tpu.dot_dimension_numbers<[1], [1], [0], [0], [0, 0, 1, 0], [], []>} : vector<8x16xbf16>, vector<8x16xbf16>, vector<8x8xf32> -> vector<8x8xf32>
    %cst_25 = arith.constant dense<0xFF800000> : vector<8xf32>
    %31 = vector.multi_reduction <maximumf>, %30, %cst_25 [1] : vector<8x8xf32> to vector<8xf32>
    %32 = vector.shape_cast %31 : vector<8xf32> to vector<8x1xf32>
    %33 = vector.broadcast %32 : vector<8x1xf32> to vector<8x8xf32>
    %34 = arith.subf %30, %33 : vector<8x8xf32>
    %35 = math.exp %34 : vector<8x8xf32>
    %cst_26 = arith.constant dense<0.000000e+00> : vector<8xf32>
    %36 = vector.multi_reduction <add>, %35, %cst_26 [1] : vector<8x8xf32> to vector<8xf32>
    %37 = vector.shape_cast %36 : vector<8xf32> to vector<8x1xf32>
    %38 = tpu.reciprocal %37 {approx = true} : vector<8x1xf32> -> vector<8x1xf32>
    %39 = vector.broadcast %38 : vector<8x1xf32> to vector<8x8xf32>
    %40 = arith.mulf %35, %39 : vector<8x8xf32>
    %41 = arith.truncf %40 : vector<8x8xf32> to vector<8x8xbf16>
    %42 = arith.truncf %25 : vector<8x16xf32> to vector<8x16xbf16>
    %cst_27 = arith.constant dense<0.000000e+00> : vector<8x16xf32>
    %43 = tpu.matmul %41, %42, %cst_27 {dimension_numbers = #tpu.dot_dimension_numbers<[1], [0], [0], [1], [0, 0, 1, 1], [], []>} : vector<8x8xbf16>, vector<8x16xbf16>, vector<8x16xf32> -> vector<8x16xf32>
    %c0_28 = arith.constant 0 : index
    %c0_29 = arith.constant 0 : index
    %44 = vector.load %arg14[%c0_28, %c0_29] : memref<8x32xf32, #tpu.memory_space<vmem>>, vector<8x32xf32>
    %45 = arith.truncf %43 : vector<8x16xf32> to vector<8x16xbf16>
    %c0_30 = arith.constant 0 : index
    %c0_31 = arith.constant 0 : index
    %c0_32 = arith.constant 0 : index
    %46 = vector.load %arg9[%c0_30, %c0_31, %c0_32] : memref<1x16x32xbf16, #tpu.memory_space<vmem>>, vector<1x16x32xbf16>
    %47 = vector.shape_cast %46 : vector<1x16x32xbf16> to vector<16x32xbf16>
    %cst_33 = arith.constant dense<0.000000e+00> : vector<8x32xf32>
    %48 = tpu.matmul %45, %47, %cst_33 {dimension_numbers = #tpu.dot_dimension_numbers<[1], [0], [0], [1], [0, 0, 1, 1], [], []>} : vector<8x16xbf16>, vector<16x32xbf16>, vector<8x32xf32> -> vector<8x32xf32>
    %49 = arith.addf %44, %48 : vector<8x32xf32>
    %c0_34 = arith.constant 0 : index
    %c0_35 = arith.constant 0 : index
    %50 = vector.load %arg14[%c0_34, %c0_35] : memref<8x32xf32, #tpu.memory_space<vmem>>, vector<8x32xf32>
    tpu.vector_store %arg14[%c0_34, %c0_35], %49 {strides = array<i32>} : memref<8x32xf32, #tpu.memory_space<vmem>>, vector<8x32xf32>,
    %c1_i32 = arith.constant 1 : i32
    %51 = arith.cmpi eq, %arg1, %c1_i32 : i32
    %52 = arith.extui %51 : i1 to i32
    %c0_i32_36 = arith.constant 0 : i32
    %53 = arith.cmpi ne, %52, %c0_i32_36 : i32
    scf.if %53 {
      %c0_37 = arith.constant 0 : index
      %c0_38 = arith.constant 0 : index
      %54 = vector.load %arg14[%c0_37, %c0_38] : memref<8x32xf32, #tpu.memory_space<vmem>>, vector<8x32xf32>
      %c0_39 = arith.constant 0 : index
      %c0_40 = arith.constant 0 : index
      %55 = vector.load %arg10[%c0_39, %c0_40] : memref<1x32xf32, #tpu.memory_space<vmem>>, vector<1x32xf32>
      %56 = vector.broadcast %55 : vector<1x32xf32> to vector<8x32xf32>
      %57 = arith.addf %54, %56 : vector<8x32xf32>
      %c0_41 = arith.constant 0 : index
      %c0_42 = arith.constant 0 : index
      %c0_43 = arith.constant 0 : index
      %58 = vector.load %arg2[%c0_41, %c0_42, %c0_43] : memref<1x8x32xbf16, #tpu.memory_space<vmem>>, vector<1x8x32xbf16>
      %59 = vector.shape_cast %58 : vector<1x8x32xbf16> to vector<8x32xbf16>
      %60 = arith.extf %59 : vector<8x32xbf16> to vector<8x32xf32>
      %61 = arith.addf %57, %60 : vector<8x32xf32>
      %cst_44 = arith.constant dense<0.000000e+00> : vector<8xf32>
      %62 = vector.multi_reduction <add>, %61, %cst_44 [1] : vector<8x32xf32> to vector<8xf32>
      %63 = vector.shape_cast %62 : vector<8xf32> to vector<8x1xf32>
      %cst_45 = arith.constant 3.200000e+01 : f32
      %64 = vector.broadcast %cst_45 : f32 to vector<8x1xf32>
      %65 = arith.divf %63, %64 : vector<8x1xf32>
      %66 = vector.broadcast %65 : vector<8x1xf32> to vector<8x32xf32>
      %67 = arith.subf %61, %66 : vector<8x32xf32>
      %68 = arith.mulf %67, %67 : vector<8x32xf32>
      %cst_46 = arith.constant dense<0.000000e+00> : vector<8xf32>
      %69 = vector.multi_reduction <add>, %68, %cst_46 [1] : vector<8x32xf32> to vector<8xf32>
      %70 = vector.shape_cast %69 : vector<8xf32> to vector<8x1xf32>
      %cst_47 = arith.constant 3.200000e+01 : f32
      %71 = vector.broadcast %cst_47 : f32 to vector<8x1xf32>
      %72 = arith.divf %70, %71 : vector<8x1xf32>
      %73 = vector.broadcast %65 : vector<8x1xf32> to vector<8x32xf32>
      %74 = arith.subf %61, %73 : vector<8x32xf32>
      %cst_48 = arith.constant 9.99999996E-13 : f32
      %75 = vector.broadcast %cst_48 : f32 to vector<8x1xf32>
      %76 = arith.addf %72, %75 : vector<8x1xf32>
      %77 = math.rsqrt %76 : vector<8x1xf32>
      %78 = vector.broadcast %77 : vector<8x1xf32> to vector<8x32xf32>
      %79 = arith.mulf %74, %78 : vector<8x32xf32>
      %c0_49 = arith.constant 0 : index
      %c0_50 = arith.constant 0 : index
      %80 = vector.load %arg11[%c0_49, %c0_50] : memref<1x32xf32, #tpu.memory_space<vmem>>, vector<1x32xf32>
      %81 = vector.broadcast %80 : vector<1x32xf32> to vector<8x32xf32>
      %82 = arith.mulf %79, %81 : vector<8x32xf32>
      %c0_51 = arith.constant 0 : index
      %c0_52 = arith.constant 0 : index
      %83 = vector.load %arg12[%c0_51, %c0_52] : memref<1x32xf32, #tpu.memory_space<vmem>>, vector<1x32xf32>
      %84 = vector.broadcast %83 : vector<1x32xf32> to vector<8x32xf32>
      %85 = arith.addf %82, %84 : vector<8x32xf32>
      %86 = arith.truncf %85 : vector<8x32xf32> to vector<8x32xbf16>
      %c0_53 = arith.constant 0 : index
      %c0_54 = arith.constant 0 : index
      %c0_55 = arith.constant 0 : index
      %87 = vector.load %arg13[%c0_53, %c0_54, %c0_55] : memref<1x8x32xbf16, #tpu.memory_space<vmem>>, vector<1x8x32xbf16>
      %88 = vector.shape_cast %87 : vector<1x8x32xbf16> to vector<8x32xbf16>
      %89 = vector.shape_cast %86 : vector<8x32xbf16> to vector<1x8x32xbf16>
      tpu.vector_store %arg13[%c0_53, %c0_54, %c0_55], %89 {strides = array<i32>} : memref<1x8x32xbf16, #tpu.memory_space<vmem>>, vector<1x8x32xbf16>,
    } else {
    }
    return
  }
  func.func @transform_0(%arg0: i32, %arg1: i32) -> (i32, i32, i32) {
    %c0_i32 = arith.constant 0 : i32
    %c0_i32_0 = arith.constant 0 : i32
    %c0_i32_1 = arith.constant 0 : i32
    return %arg0, %c0_i32, %c0_i32_0 : i32, i32, i32
  }
  func.func @transform_1(%arg0: i32, %arg1: i32) -> (i32, i32, i32) {
    %c0_i32 = arith.constant 0 : i32
    %c0_i32_0 = arith.constant 0 : i32
    %c0_i32_1 = arith.constant 0 : i32
    return %arg1, %c0_i32, %c0_i32_0 : i32, i32, i32
  }
  func.func @transform_2(%arg0: i32, %arg1: i32) -> (i32, i32, i32) {
    %c0_i32 = arith.constant 0 : i32
    %c0_i32_0 = arith.constant 0 : i32
    %c0_i32_1 = arith.constant 0 : i32
    return %arg1, %c0_i32, %c0_i32_0 : i32, i32, i32
  }
  func.func @transform_3(%arg0: i32, %arg1: i32) -> (i32, i32, i32) {
    %c0_i32 = arith.constant 0 : i32
    %c0_i32_0 = arith.constant 0 : i32
    %c0_i32_1 = arith.constant 0 : i32
    return %arg1, %c0_i32, %c0_i32_0 : i32, i32, i32
  }
  func.func @transform_4(%arg0: i32, %arg1: i32) -> (i32, i32, i32) {
    %c0_i32 = arith.constant 0 : i32
    %c0_i32_0 = arith.constant 0 : i32
    %c0_i32_1 = arith.constant 0 : i32
    return %arg1, %c0_i32, %c0_i32_0 : i32, i32, i32
  }
  func.func @transform_5(%arg0: i32, %arg1: i32) -> (i32, i32, i32) {
    %c0_i32 = arith.constant 0 : i32
    %c0_i32_0 = arith.constant 0 : i32
    %c0_i32_1 = arith.constant 0 : i32
    return %arg1, %c0_i32, %c0_i32_0 : i32, i32, i32
  }
  func.func @transform_6(%arg0: i32, %arg1: i32) -> (i32, i32, i32) {
    %c0_i32 = arith.constant 0 : i32
    %c0_i32_0 = arith.constant 0 : i32
    %c0_i32_1 = arith.constant 0 : i32
    return %arg1, %c0_i32, %c0_i32_0 : i32, i32, i32
  }
  func.func @transform_7(%arg0: i32, %arg1: i32) -> (i32, i32, i32) {
    %c0_i32 = arith.constant 0 : i32
    %c0_i32_0 = arith.constant 0 : i32
    %c0_i32_1 = arith.constant 0 : i32
    return %arg1, %c0_i32, %c0_i32_0 : i32, i32, i32
  }
  func.func @transform_8(%arg0: i32, %arg1: i32) -> (i32, i32) {
    %c0_i32 = arith.constant 0 : i32
    %c0_i32_0 = arith.constant 0 : i32
    %c0_i32_1 = arith.constant 0 : i32
    return %c0_i32, %c0_i32_0 : i32, i32
  }
  func.func @transform_9(%arg0: i32, %arg1: i32) -> (i32, i32) {
    %c0_i32 = arith.constant 0 : i32
    %c0_i32_0 = arith.constant 0 : i32
    %c0_i32_1 = arith.constant 0 : i32
    return %c0_i32, %c0_i32_0 : i32, i32
  }
  func.func @transform_10(%arg0: i32, %arg1: i32) -> (i32, i32) {
    %c0_i32 = arith.constant 0 : i32
    %c0_i32_0 = arith.constant 0 : i32
    %c0_i32_1 = arith.constant 0 : i32
    return %c0_i32, %c0_i32_0 : i32, i32
  }
  func.func @transform_11(%arg0: i32, %arg1: i32) -> (i32, i32, i32) {
    %c0_i32 = arith.constant 0 : i32
    %c0_i32_0 = arith.constant 0 : i32
    %c0_i32_1 = arith.constant 0 : i32
    return %arg0, %c0_i32, %c0_i32_0 : i32, i32, i32
  }
}

module attributes {stable_mosaic.version = 11 : i64} {
  func.func @_ffn_kernel(%arg0: i32, %arg1: memref<16x32xbf16, #tpu.memory_space<vmem>>, %arg2: memref<32x64xbf16, #tpu.memory_space<vmem>>, %arg3: memref<1x64xf32, #tpu.memory_space<vmem>>, %arg4: memref<64x32xbf16, #tpu.memory_space<vmem>>, %arg5: memref<1x32xf32, #tpu.memory_space<vmem>>, %arg6: memref<1x32xf32, #tpu.memory_space<vmem>>, %arg7: memref<1x32xf32, #tpu.memory_space<vmem>>, %arg8: memref<16x32xbf16, #tpu.memory_space<vmem>>) attributes {dimension_semantics = [#tpu.dimension_semantics<parallel>], iteration_bounds = array<i64: 1>, scalar_prefetch = 0 : i64, scratch_operands = 0 : i64, tpu.core_type = #tpu.core_type<tc>, window_params = [{transform_indices = @transform_0, window_bounds = array<i64: 16, 32>}, {pipeline_mode = #tpu.pipeline_mode<synchronous>, transform_indices = @transform_1, window_bounds = array<i64: 32, 64>}, {pipeline_mode = #tpu.pipeline_mode<synchronous>, transform_indices = @transform_2, window_bounds = array<i64: 1, 64>}, {pipeline_mode = #tpu.pipeline_mode<synchronous>, transform_indices = @transform_3, window_bounds = array<i64: 64, 32>}, {pipeline_mode = #tpu.pipeline_mode<synchronous>, transform_indices = @transform_4, window_bounds = array<i64: 1, 32>}, {pipeline_mode = #tpu.pipeline_mode<synchronous>, transform_indices = @transform_5, window_bounds = array<i64: 1, 32>}, {pipeline_mode = #tpu.pipeline_mode<synchronous>, transform_indices = @transform_6, window_bounds = array<i64: 1, 32>}, {transform_indices = @transform_7, window_bounds = array<i64: 16, 32>}]} {
    %c0 = arith.constant 0 : index
    %c0_0 = arith.constant 0 : index
    %0 = vector.load %arg1[%c0, %c0_0] : memref<16x32xbf16, #tpu.memory_space<vmem>>, vector<16x32xbf16>
    %c0_1 = arith.constant 0 : index
    %c0_2 = arith.constant 0 : index
    %1 = vector.load %arg2[%c0_1, %c0_2] : memref<32x64xbf16, #tpu.memory_space<vmem>>, vector<32x64xbf16>
    %cst = arith.constant dense<0.000000e+00> : vector<16x64xf32>
    %2 = tpu.matmul %0, %1, %cst {dimension_numbers = #tpu.dot_dimension_numbers<[1], [0], [0], [1], [0, 0, 1, 1], [], []>} : vector<16x32xbf16>, vector<32x64xbf16>, vector<16x64xf32> -> vector<16x64xf32>
    %c0_3 = arith.constant 0 : index
    %c0_4 = arith.constant 0 : index
    %3 = vector.load %arg3[%c0_3, %c0_4] : memref<1x64xf32, #tpu.memory_space<vmem>>, vector<1x64xf32>
    %4 = vector.broadcast %3 : vector<1x64xf32> to vector<16x64xf32>
    %5 = arith.addf %2, %4 : vector<16x64xf32>
    %6 = arith.mulf %5, %5 : vector<16x64xf32>
    %7 = arith.mulf %5, %6 : vector<16x64xf32>
    %cst_5 = arith.constant 4.471500e-02 : f32
    %8 = vector.broadcast %cst_5 : f32 to vector<16x64xf32>
    %9 = arith.mulf %8, %7 : vector<16x64xf32>
    %10 = arith.addf %5, %9 : vector<16x64xf32>
    %cst_6 = arith.constant 0.797884583 : f32
    %11 = vector.broadcast %cst_6 : f32 to vector<16x64xf32>
    %12 = arith.mulf %11, %10 : vector<16x64xf32>
    %13 = math.tanh %12 : vector<16x64xf32>
    %cst_7 = arith.constant 1.000000e+00 : f32
    %14 = vector.broadcast %cst_7 : f32 to vector<16x64xf32>
    %15 = arith.addf %14, %13 : vector<16x64xf32>
    %cst_8 = arith.constant 5.000000e-01 : f32
    %16 = vector.broadcast %cst_8 : f32 to vector<16x64xf32>
    %17 = arith.mulf %16, %15 : vector<16x64xf32>
    %18 = arith.mulf %5, %17 : vector<16x64xf32>
    %19 = arith.truncf %18 : vector<16x64xf32> to vector<16x64xbf16>
    %c0_9 = arith.constant 0 : index
    %c0_10 = arith.constant 0 : index
    %20 = vector.load %arg4[%c0_9, %c0_10] : memref<64x32xbf16, #tpu.memory_space<vmem>>, vector<64x32xbf16>
    %cst_11 = arith.constant dense<0.000000e+00> : vector<16x32xf32>
    %21 = tpu.matmul %19, %20, %cst_11 {dimension_numbers = #tpu.dot_dimension_numbers<[1], [0], [0], [1], [0, 0, 1, 1], [], []>} : vector<16x64xbf16>, vector<64x32xbf16>, vector<16x32xf32> -> vector<16x32xf32>
    %c0_12 = arith.constant 0 : index
    %c0_13 = arith.constant 0 : index
    %22 = vector.load %arg5[%c0_12, %c0_13] : memref<1x32xf32, #tpu.memory_space<vmem>>, vector<1x32xf32>
    %23 = vector.broadcast %22 : vector<1x32xf32> to vector<16x32xf32>
    %24 = arith.addf %21, %23 : vector<16x32xf32>
    %25 = arith.extf %0 : vector<16x32xbf16> to vector<16x32xf32>
    %26 = arith.addf %24, %25 : vector<16x32xf32>
    %cst_14 = arith.constant dense<0.000000e+00> : vector<16xf32>
    %27 = vector.multi_reduction <add>, %26, %cst_14 [1] : vector<16x32xf32> to vector<16xf32>
    %28 = vector.shape_cast %27 : vector<16xf32> to vector<16x1xf32>
    %cst_15 = arith.constant 3.200000e+01 : f32
    %29 = vector.broadcast %cst_15 : f32 to vector<16x1xf32>
    %30 = arith.divf %28, %29 : vector<16x1xf32>
    %31 = vector.broadcast %30 : vector<16x1xf32> to vector<16x32xf32>
    %32 = arith.subf %26, %31 : vector<16x32xf32>
    %33 = arith.mulf %32, %32 : vector<16x32xf32>
    %cst_16 = arith.constant dense<0.000000e+00> : vector<16xf32>
    %34 = vector.multi_reduction <add>, %33, %cst_16 [1] : vector<16x32xf32> to vector<16xf32>
    %35 = vector.shape_cast %34 : vector<16xf32> to vector<16x1xf32>
    %cst_17 = arith.constant 3.200000e+01 : f32
    %36 = vector.broadcast %cst_17 : f32 to vector<16x1xf32>
    %37 = arith.divf %35, %36 : vector<16x1xf32>
    %38 = vector.broadcast %30 : vector<16x1xf32> to vector<16x32xf32>
    %39 = arith.subf %26, %38 : vector<16x32xf32>
    %cst_18 = arith.constant 9.99999996E-13 : f32
    %40 = vector.broadcast %cst_18 : f32 to vector<16x1xf32>
    %41 = arith.addf %37, %40 : vector<16x1xf32>
    %42 = math.rsqrt %41 : vector<16x1xf32>
    %43 = vector.broadcast %42 : vector<16x1xf32> to vector<16x32xf32>
    %44 = arith.mulf %39, %43 : vector<16x32xf32>
    %c0_19 = arith.constant 0 : index
    %c0_20 = arith.constant 0 : index
    %45 = vector.load %arg6[%c0_19, %c0_20] : memref<1x32xf32, #tpu.memory_space<vmem>>, vector<1x32xf32>
    %46 = vector.broadcast %45 : vector<1x32xf32> to vector<16x32xf32>
    %47 = arith.mulf %44, %46 : vector<16x32xf32>
    %c0_21 = arith.constant 0 : index
    %c0_22 = arith.constant 0 : index
    %48 = vector.load %arg7[%c0_21, %c0_22] : memref<1x32xf32, #tpu.memory_space<vmem>>, vector<1x32xf32>
    %49 = vector.broadcast %48 : vector<1x32xf32> to vector<16x32xf32>
    %50 = arith.addf %47, %49 : vector<16x32xf32>
    %51 = arith.truncf %50 : vector<16x32xf32> to vector<16x32xbf16>
    %c0_23 = arith.constant 0 : index
    %c0_24 = arith.constant 0 : index
    %52 = vector.load %arg8[%c0_23, %c0_24] : memref<16x32xbf16, #tpu.memory_space<vmem>>, vector<16x32xbf16>
    tpu.vector_store %arg8[%c0_23, %c0_24], %51 {strides = array<i32>} : memref<16x32xbf16, #tpu.memory_space<vmem>>, vector<16x32xbf16>,
    return
  }
  func.func @transform_0(%arg0: i32) -> (i32, i32) {
    %c0_i32 = arith.constant 0 : i32
    %c0_i32_0 = arith.constant 0 : i32
    return %arg0, %c0_i32 : i32, i32
  }
  func.func @transform_1(%arg0: i32) -> (i32, i32) {
    %c0_i32 = arith.constant 0 : i32
    %c0_i32_0 = arith.constant 0 : i32
    %c0_i32_1 = arith.constant 0 : i32
    return %c0_i32, %c0_i32_0 : i32, i32
  }
  func.func @transform_2(%arg0: i32) -> (i32, i32) {
    %c0_i32 = arith.constant 0 : i32
    %c0_i32_0 = arith.constant 0 : i32
    %c0_i32_1 = arith.constant 0 : i32
    return %c0_i32, %c0_i32_0 : i32, i32
  }
  func.func @transform_3(%arg0: i32) -> (i32, i32) {
    %c0_i32 = arith.constant 0 : i32
    %c0_i32_0 = arith.constant 0 : i32
    %c0_i32_1 = arith.constant 0 : i32
    return %c0_i32, %c0_i32_0 : i32, i32
  }
  func.func @transform_4(%arg0: i32) -> (i32, i32) {
    %c0_i32 = arith.constant 0 : i32
    %c0_i32_0 = arith.constant 0 : i32
    %c0_i32_1 = arith.constant 0 : i32
    return %c0_i32, %c0_i32_0 : i32, i32
  }
  func.func @transform_5(%arg0: i32) -> (i32, i32) {
    %c0_i32 = arith.constant 0 : i32
    %c0_i32_0 = arith.constant 0 : i32
    %c0_i32_1 = arith.constant 0 : i32
    return %c0_i32, %c0_i32_0 : i32, i32
  }
  func.func @transform_6(%arg0: i32) -> (i32, i32) {
    %c0_i32 = arith.constant 0 : i32
    %c0_i32_0 = arith.constant 0 : i32
    %c0_i32_1 = arith.constant 0 : i32
    return %c0_i32, %c0_i32_0 : i32, i32
  }
  func.func @transform_7(%arg0: i32) -> (i32, i32) {
    %c0_i32 = arith.constant 0 : i32
    %c0_i32_0 = arith.constant 0 : i32
    return %arg0, %c0_i32 : i32, i32
  }
}

module attributes {stable_mosaic.version = 11 : i64} {
  func.func @_head_kernel(%arg0: memref<2x32xbf16, #tpu.memory_space<vmem>>, %arg1: memref<32x32xf32, #tpu.memory_space<vmem>>, %arg2: memref<1x32xf32, #tpu.memory_space<vmem>>, %arg3: memref<32x2xf32, #tpu.memory_space<vmem>>, %arg4: memref<1x2xf32, #tpu.memory_space<vmem>>, %arg5: memref<2x1xi32, #tpu.memory_space<vmem>>, %arg6: memref<1x1xf32, #tpu.memory_space<vmem>>, %arg7: memref<2x2xf32, #tpu.memory_space<vmem>>) attributes {dimension_semantics = [], scalar_prefetch = 0 : i64, scratch_operands = 0 : i64, tpu.core_type = #tpu.core_type<tc>} {
    %c0 = arith.constant 0 : index
    %c0_0 = arith.constant 0 : index
    %0 = vector.load %arg0[%c0, %c0_0] : memref<2x32xbf16, #tpu.memory_space<vmem>>, vector<2x32xbf16>
    %1 = arith.extf %0 : vector<2x32xbf16> to vector<2x32xf32>
    %c0_1 = arith.constant 0 : index
    %c0_2 = arith.constant 0 : index
    %2 = vector.load %arg1[%c0_1, %c0_2] : memref<32x32xf32, #tpu.memory_space<vmem>>, vector<32x32xf32>
    %cst = arith.constant dense<0.000000e+00> : vector<2x32xf32>
    %3 = tpu.matmul %1, %2, %cst {dimension_numbers = #tpu.dot_dimension_numbers<[1], [0], [0], [1], [0, 0, 1, 1], [], []>} : vector<2x32xf32>, vector<32x32xf32>, vector<2x32xf32> -> vector<2x32xf32>
    %c0_3 = arith.constant 0 : index
    %c0_4 = arith.constant 0 : index
    %4 = vector.load %arg2[%c0_3, %c0_4] : memref<1x32xf32, #tpu.memory_space<vmem>>, vector<1x32xf32>
    %5 = vector.broadcast %4 : vector<1x32xf32> to vector<2x32xf32>
    %6 = arith.addf %3, %5 : vector<2x32xf32>
    %7 = math.tanh %6 : vector<2x32xf32>
    %c0_5 = arith.constant 0 : index
    %c0_6 = arith.constant 0 : index
    %8 = vector.load %arg3[%c0_5, %c0_6] : memref<32x2xf32, #tpu.memory_space<vmem>>, vector<32x2xf32>
    %cst_7 = arith.constant dense<0.000000e+00> : vector<2x2xf32>
    %9 = tpu.matmul %7, %8, %cst_7 {dimension_numbers = #tpu.dot_dimension_numbers<[1], [0], [0], [1], [0, 0, 1, 1], [], []>} : vector<2x32xf32>, vector<32x2xf32>, vector<2x2xf32> -> vector<2x2xf32>
    %c0_8 = arith.constant 0 : index
    %c0_9 = arith.constant 0 : index
    %10 = vector.load %arg4[%c0_8, %c0_9] : memref<1x2xf32, #tpu.memory_space<vmem>>, vector<1x2xf32>
    %11 = vector.broadcast %10 : vector<1x2xf32> to vector<2x2xf32>
    %12 = arith.addf %9, %11 : vector<2x2xf32>
    %cst_10 = arith.constant dense<0xFF800000> : vector<2xf32>
    %13 = vector.multi_reduction <maximumf>, %12, %cst_10 [1] : vector<2x2xf32> to vector<2xf32>
    %14 = vector.shape_cast %13 : vector<2xf32> to vector<2x1xf32>
    %15 = vector.broadcast %14 : vector<2x1xf32> to vector<2x2xf32>
    %16 = arith.subf %12, %15 : vector<2x2xf32>
    %17 = math.exp %16 : vector<2x2xf32>
    %cst_11 = arith.constant dense<0.000000e+00> : vector<2xf32>
    %18 = vector.multi_reduction <add>, %17, %cst_11 [1] : vector<2x2xf32> to vector<2xf32>
    %19 = vector.shape_cast %18 : vector<2xf32> to vector<2x1xf32>
    %20 = math.log %19 : vector<2x1xf32>
    %21 = arith.addf %14, %20 : vector<2x1xf32>
    %22 = tpu.iota {dimensions = array<i32: 1>} : vector<2x2xi32>
    %c0_12 = arith.constant 0 : index
    %c0_13 = arith.constant 0 : index
    %23 = vector.load %arg5[%c0_12, %c0_13] : memref<2x1xi32, #tpu.memory_space<vmem>>, vector<2x1xi32>
    %24 = vector.broadcast %23 : vector<2x1xi32> to vector<2x2xi32>
    %25 = arith.cmpi eq, %22, %24 : vector<2x2xi32>
    %cst_14 = arith.constant 0.000000e+00 : f32
    %26 = vector.broadcast %cst_14 : f32 to vector<2x2xf32>
    %27 = arith.select %25, %12, %26 : vector<2x2xi1>, vector<2x2xf32>
    %cst_15 = arith.constant dense<0.000000e+00> : vector<2xf32>
    %28 = vector.multi_reduction <add>, %27, %cst_15 [1] : vector<2x2xf32> to vector<2xf32>
    %29 = vector.shape_cast %28 : vector<2xf32> to vector<2x1xf32>
    %30 = arith.subf %21, %29 : vector<2x1xf32>
    %cst_16 = arith.constant dense<0.000000e+00> : vector<1xf32>
    %31 = vector.multi_reduction <add>, %30, %cst_16 [0] : vector<2x1xf32> to vector<1xf32>
    %32 = vector.shape_cast %31 : vector<1xf32> to vector<1x1xf32>
    %cst_17 = arith.constant 5.000000e-01 : f32
    %33 = vector.broadcast %cst_17 : f32 to vector<1x1xf32>
    %34 = arith.mulf %32, %33 : vector<1x1xf32>
    %c0_18 = arith.constant 0 : index
    %c0_19 = arith.constant 0 : index
    %35 = vector.load %arg6[%c0_18, %c0_19] : memref<1x1xf32, #tpu.memory_space<vmem>>, vector<1x1xf32>
    tpu.vector_store %arg6[%c0_18, %c0_19], %34 {strides = array<i32>} : memref<1x1xf32, #tpu.memory_space<vmem>>, vector<1x1xf32>,
    %c0_20 = arith.constant 0 : index
    %c0_21 = arith.constant 0 : index
    %36 = vector.load %arg7[%c0_20, %c0_21] : memref<2x2xf32, #tpu.memory_space<vmem>>, vector<2x2xf32>
    tpu.vector_store %arg7[%c0_20, %c0_21], %12 {strides = array<i32>} : memref<2x2xf32, #tpu.memory_space<vmem>>, vector<2x2xf32>,
    return
  }
}

</mosaic_0001>

<bundles_post_ra>
// kernel: bert_forward.6
= control target key start
LH: loop header
LB: loop body
LE: loop exit
PB: predicated region body
PF: predicated region fallthrough
CT: control target
= control target key end

     0   :  { %vm16_vm0 = vcmask 261120   ;;  %v98_v4 = vmov 32.0   ;;  %vm82_vm6 = vcmask 257024   ;;  %s141_s0 = inlined_call_operand.vmem [shape: f32[16,32], index: 0, kind: input, shape index: {}]   ;;  %s142_s1 = inlined_call_operand.vmem [shape: f32[1,32], index: 1, kind: input, shape index: {}]   ;;  %s143_s2 = inlined_call_operand.vmem [shape: f32[1,32], index: 2, kind: input, shape index: {}]   ;;  %s144_s3 = inlined_call_operand.vmem [shape: bf16[16,32], index: 3, kind: output, shape index: {}]  }
   0x1   :  { %v14_v0 = vld [vmem:[%s141_s0] sm:$0xff]  ;;  %v15_v2 = vld [vmem:[%s141_s0 + $0x8] sm:$0xff]  ;;  %92 = vrcp.f32 %v98_v4 }
   0x2   :  { %v17_v1 = vsel %vm16_vm0, %v14_v0, 0.0  ;;  %v20_v3 = vsel %vm16_vm0, %v15_v2, 0.0  ;;  %v90_v35 = vld [vmem:[%s142_s1] ss:$0 sm:$0xff] }
   0x3   :  { %18 = vadd.xlane.f32.xlu0 %v17_v1  ;;  %v91_v38 = vld [vmem:[%s143_s2] ss:$0 sm:$0xff] }
   0x7   :  { %v93_v5 = vpop.eup %92 }
   0x8   :  { %v24_v6 = vmul.f32 32.0, %v93_v5  ;;  %vm28_vm1 = vweird.f32 %v93_v5 }
   0xa   :  { %v25_v7 = vsub.f32 1.0, %v24_v6 }
   0xb   :  { %21 = vadd.xlane.f32.xlu0 %v20_v3 }
   0xc   :  { %v26_v8 = vmul.f32 %v93_v5, %v25_v7 }
   0xe   :  { %v27_v9 = vadd.f32 %v93_v5, %v26_v8 }
  0x10   :  { %v29_v10 = vsel %vm28_vm1, %v93_v5, %v27_v9 }
  0x76   :  { %v19_v11 = vpop.xlane.xlu0 %18 }
  0x77   :  { %v30_v12 = vmul.f32 %v29_v10, %v19_v11 }
  0x79   :  { %v32_v13 = vsub.f32 %v14_v0, %v30_v12 }
  0x7b   :  { %v34_v14 = vmul.f32 %v32_v13, %v32_v13 }
  0x7d   :  { %v36_v15 = vsel %vm16_vm0, %v34_v14, 0.0 }
  0x7e   :  { %37 = vadd.xlane.f32.xlu1 %v36_v15  ;;  %v22_v16 = vpop.xlane.xlu0 %21 }
  0x7f   :  { %v31_v17 = vmul.f32 %v29_v10, %v22_v16 }
  0x81   :  { %v33_v18 = vsub.f32 %v15_v2, %v31_v17 }
  0x83   :  { %v35_v19 = vmul.f32 %v33_v18, %v33_v18 }
  0x85   :  { %v39_v20 = vsel %vm16_vm0, %v35_v19, 0.0 }
  0x86   :  { %40 = vadd.xlane.f32.xlu1 %v39_v20 }
  0xf1   :  { %v38_v21 = vpop.xlane.xlu1 %37 }
  0xf2   :  { %v42_v22 = vmul.f32 %v38_v21, %v29_v10 }
  0xf4   :  { %v44_v23 = vadd.f32 1e-12, %v42_v22 }
  0xf6   :  { %94 = vrsqrt.f32 %v44_v23  ;;  %vm52_vm3 = vweird.f32 %v44_v23 }
  0xf9   :  { %v41_v24 = vpop.xlane.xlu1 %40 }
  0xfa   :  { %v43_v25 = vmul.f32 %v41_v24, %v29_v10 }
  0xfc   :  { %v95_v26 = vpop.eup %94  ;;  %v45_v27 = vadd.f32 1e-12, %v43_v25 }
  0xfd   :  { %v47_v28 = vmul.f32 %v95_v26, %v44_v23  ;;  %vm53_vm2 = vweird.f32 %v95_v26 }
  0xfe   :  { %96 = vrsqrt.f32 %v45_v27  ;;  %vm54_vm4 = vmor %vm52_vm3, %vm53_vm2  ;;  %vm62_vm7 = vweird.f32 %v45_v27 }
  0xff   :  { %v48_v29 = vmul.f32 %v95_v26, %v47_v28 }
 0x101   :  { %v49_v30 = vmul.f32 0.5, %v48_v29 }
 0x103   :  { %v50_v31 = vsub.f32 1.5, %v49_v30 }
 0x104   :  { %v97_v32 = vpop.eup %96 }
 0x105   :  { %v51_v33 = vmul.f32 %v95_v26, %v50_v31  ;;  %v57_v34 = vmul.f32 %v97_v32, %v45_v27  ;;  %vm63_vm5 = vweird.f32 %v97_v32 }
 0x106   :  { %vm64_vm8 = vmor %vm62_vm7, %vm63_vm5 }
 0x107   :  { %v55_v36 = vsel %vm54_vm4, %v95_v26, %v51_v33  ;;  %v58_v37 = vmul.f32 %v97_v32, %v57_v34 }
 0x108   :  { %v66_v39 = vmul.f32 %v55_v36, %v32_v13 }
 0x109   :  { %v59_v40 = vmul.f32 0.5, %v58_v37 }
 0x10a   :  { %v72_v41 = vmul.f32 %v90_v35, %v66_v39 }
 0x10b   :  { %v60_v42 = vsub.f32 1.5, %v59_v40 }
 0x10c   :  { %v78_v43 = vadd.f32 %v91_v38, %v72_v41 }
 0x10d   :  { %v61_v44 = vmul.f32 %v97_v32, %v60_v42 }
 0x10e   :  { %v80_v45 = vpack.c.bf16 %v78_v43, %v78_v43 }
 0x10f   :  { %v65_v46 = vsel %vm64_vm8, %v97_v32, %v61_v44 }
 0x110   :  { %83 = vst.msk [vmem:[%s144_s3] sm:$0xf] %vm82_vm6, %v80_v45  ;;  %v67_v47 = vmul.f32 %v65_v46, %v33_v18 }
 0x112   :  { %v73_v48 = vmul.f32 %v90_v35, %v67_v47 }
 0x114   :  { %v79_v49 = vadd.f32 %v91_v38, %v73_v48 }
 0x116   :  { %v81_v50 = vpack.c.bf16 %v79_v49, %v79_v49 }
 0x118   :  { %84 = vst.msk [vmem:[%s144_s3 + $0x4] sm:$0xf] %vm82_vm6, %v81_v50 }

// kernel: bert_forward.7
= control target key start
LH: loop header
LB: loop body
LE: loop exit
PB: predicated region body
PF: predicated region fallthrough
CT: control target
= control target key end

     0   :  { %s1128_s17 = smov 0   ;;  %s1130_s18 = smov 0   ;;  %s1253_s0 = inlined_call_operand.vmem [shape: bf16[2,8,32], index: 0, kind: input, shape index: {}]   ;;  %s1254_s1 = inlined_call_operand.vmem [shape: bf16[2,32,16], index: 1, kind: input, shape index: {}]   ;;  %s1255_s2 = inlined_call_operand.vmem [shape: bf16[2,32,16], index: 2, kind: input, shape index: {}]   ;;  %s1256_s3 = inlined_call_operand.vmem [shape: bf16[2,32,16], index: 3, kind: input, shape index: {}]   ;;  %s1257_s4 = inlined_call_operand.vmem [shape: f32[2,1,16], index: 4, kind: input, shape index: {}]   ;;  %s1258_s5 = inlined_call_operand.vmem [shape: f32[2,1,16], index: 5, kind: input, shape index: {}]   ;;  %s1259_s6 = inlined_call_operand.vmem [shape: f32[2,1,16], index: 6, kind: input, shape index: {}]   ;;  %s1260_s7 = inlined_call_operand.vmem [shape: bf16[2,16,32], index: 7, kind: input, shape index: {}]   ;;  %s1261_s8 = inlined_call_operand.vmem [shape: f32[1,32], index: 8, kind: input, shape index: {}]   ;;  %s1262_s9 = inlined_call_operand.vmem [shape: f32[1,32], index: 9, kind: input, shape index: {}]   ;;  %s1263_s10 = inlined_call_operand.vmem [shape: f32[1,32], index: 10, kind: input, shape index: {}]   ;;  %s1264_s11 = inlined_call_operand.vmem [shape: bf16[2,8,32], index: 11, kind: output, shape index: {}]  }
   0x1   :  { %1268 = sst [smem:[#allocation8_spill]] %s1253_s0  ;;  %s1132_s19 = smov 0  }
   0x2   :  { %1269 = sst [smem:[#allocation9_spill]] %s1254_s1  ;;  %s1134_s20 = smov 0  }
   0x3   :  { %1270 = sst [smem:[#allocation10_spill]] %s1255_s2  ;;  %s1136_s21 = smov 0  }
   0x4   :  { %1271 = sst [smem:[#allocation11_spill]] %s1263_s10 }
   0x5 LB: > { %1272 = sst [smem:[#allocation3_spill]] %s1056_s19  ;;  %s30_s22 = sadd.s32 1, %s1056_s19  ;;  %s1064_s21 = sphi %s1136_s21, %s21_s21   ;;  %s1060_s20 = sphi %s1134_s20, %s1285_s20   ;;  %s1056_s19 = sphi %s1132_s19, %s1284_s19   ;;  %s1052_s18 = sphi %s1130_s18, %s1283_s18   ;;  %s1048_s17 = sphi %s1128_s17, %s1282_s17  }
   0x6   : > { %1273 = sst [smem:[#allocation4_spill]] %s1060_s20  ;;  %s33_s23 = sadd.s32 1, %s1060_s20 }
   0x7   : > { %1274 = sst [smem:[#allocation5_spill]] %s1064_s21  ;;  %p31_p0 = scmp.ge.s32.totalorder %s30_s22, 2 }
   0x8   : > { %p910_p1 = scmp.ge.s32.totalorder %s1064_s21, 1  ;;  %p412_p2 = scmp.lt.s32.totalorder %s1064_s21, 5 }
   0x9   : > { %s1287_s22 = smov (%p31_p0, %s30_s22), 0  ;;  %s1289_s23 = smov (!%p31_p0, %s33_s23), %s1060_s20 }
   0xa   : > { %1275 = sst [smem:[#allocation6_spill]] %s1287_s22  ;;  %p413_p3 = pnand %p910_p1, %p412_p2 }
   0xb   : > { %p35_p4 = scmp.ge.s32.totalorder %s1289_s23, 2  ;;  %p479_p5 = scmp.lt.s32.totalorder (!%p413_p3), %s1052_s18, 1 }
   0xc   : > { %416 = sbr.rel (%p413_p3) target bundleno = 1107 (0x453), region = 64  ;;  %p483_p6 = scmp.lt.s32.totalorder (!%p413_p3), %s1048_s17, 1 }
   0xd   : > { %s1291_s23 = smov (%p35_p4, %s1289_s23), 0  ;;  %s1277_s0 = sld [smem:[#allocation8_spill]] (!%p413_p3) }
   0xe   : > { %1276 = sst [smem:[#allocation7_spill]] %s1291_s23  ;;  %p921_p7 = scmp.ne.s32.totalorder (!%p413_p3), %s1048_s17, 0 }
   0xf   : > { %s1278_s1 = sld [smem:[#allocation9_spill]] (!%p413_p3) }
  0x10   : > { %s1279_s2 = sld [smem:[#allocation10_spill]] (!%p413_p3) }
  0x11   : > { %s1293_s18 = smov (!%p479_p5, %s1052_s18), 1 }
  0x12   : > { %s1162_s24 = scalar_select %p483_p6, %s1048_s17, 1 }
  0x13   : > { %s911_s25 = sshll.u32 %s1293_s18, 2 }
  0x14   : > { %s1167_s28 = scalar_lea.vmem %s1277_s0, %s911_s25  ;;  %s959_s29 = sshll.u32 %s1162_s24, 4 }
  0x15   : > { %s487_s13 = scalar_lea.vmem %s1278_s1, %s959_s29  ;;  %s1179_s20 = scalar_lea.vmem %s1256_s3, %s959_s29 }
  0x16   : > { %s492_s16 = scalar_lea.vmem %s1279_s2, %s959_s29  ;;  %s500_s26 = scalar_lea.vmem %s1257_s4, %s1162_s24 }
  0x17   : > { %s503_s21 = scalar_lea.vmem %s1258_s5, %s1162_s24  ;;  %s506_s12 = scalar_lea.vmem %s1259_s6, %s1162_s24 }
  0x18   : > { %s962_s1 = sshll.u32 %s1162_s24, 3  ;;  %s1197_s2 = scalar_lea.vmem %s1264_s11, %s911_s25 }
  0x19   : > { %s1202_s29 = scalar_lea.vmem %s1260_s7, %s962_s1  ;;  %520 = sbr.rel (%p921_p7) target bundleno = 32 (0x20), region = 68 }
  0x1e   : > { %vm521_vm0 = vcmask 261120   ;;  %v1066_v0 = vmov 0.0  }
  0x1f   : > { %522 = vst.msk [vmem:[#allocation2] sm:$0xff] %vm521_vm0, %v1066_v0 }
  0x20 PF: > { %v964_v1 = vld [vmem:[%s487_s13 + $0x8] sm:$0xff]  ;;  %v963_v3 = vld [vmem:[%s487_s13] sm:$0xff]  ;;  %vm544_vm1 = vcmask 261120   ;;  %vm630_vm2 = vcmask 130048   ;;  %vm650_vm3 = vcmask 64512   ;;  %vm667_vm4 = vcmask 1043456  }
  0x21   : > { %v966_v2 = vld [vmem:[%s492_s16 + $0x8] sm:$0xff]  ;;  %554 = vmatpush.bf16.msra.mxu0 %v964_v1  ;;  %v965_v4 = vld [vmem:[%s492_s16] sm:$0xff]  ;;  %p956_p8 = scmp.ne.s32.totalorder %s1048_s17, 1 }
  0x22   : > { %587 = vmatpush.bf16.msra.mxu1 %v966_v2  ;;  %v523_v5 = vld [vmem:[%s1167_s28] sm:$0xf]  ;;  %v968_v18 = vld [vmem:[%s1179_s20 + $0x8] sm:$0xff]  ;;  %s1280_s25 = sld [smem:[#allocation11_spill]] (!%p956_p8) }
  0x23   : > { %v1012_v6 = vld [vmem:[%s500_s26] ss:$0 sm:$0xff]  ;;  %620 = vmatpush.bf16.msra.mxu2 %v968_v18 }
  0x24   : > { %v1013_v7 = vld [vmem:[%s503_s21] ss:$0 sm:$0xff] }
  0x25   : > { %555 = vmatpush.bf16.msra.mxu0 %v963_v3  ;;  %v967_v19 = vld [vmem:[%s1179_s20] sm:$0xff] }
  0x26   : > { %588 = vmatpush.bf16.msra.mxu1 %v965_v4  ;;  %v1014_v23 = vld [vmem:[%s506_s12] ss:$0 sm:$0xff] }
  0x27   : > { %621 = vmatpush.bf16.msra.mxu2 %v967_v19  ;;  %v969_v34 = vld [vmem:[%s1202_s29] sm:$0xff] }
  0x28   : > { %930 = vmatmul.msk.bf16.vlgmr.msra.gmra.mxu0 %vm544_vm1, %v523_v5  ;;  %v684_v42 = vld [vmem:[#allocation2] sm:$0xff] }
  0x29   : > { %939 = vmatmul.msk.bf16.vlgmr.msra.gmra.mxu1 %vm544_vm1, %v523_v5 }
  0x2a   : > { %948 = vmatmul.msk.bf16.vlgmr.msra.gmra.mxu2 %vm544_vm1, %v523_v5  ;;  %704 = vmatpush.bf16.msrb.mxu1 %v969_v34 }
  0xa5   : > { %v557_v8 = vpop.f32.mrf.mxu0 }
  0xa6   : > { %v590_v9 = vpop.f32.mrf.mxu1  ;;  %v558_v10 = vadd.f32 %v1012_v6, %v557_v8 }
  0xa7   : > { %v591_v11 = vadd.f32 %v1013_v7, %v590_v9 }
  0xa8   : > { %v627_v13 = vmul.f32 0.25, %v558_v10 }
  0xa9   : > { %v629_v12 = vpack.c.bf16 %v591_v11, %v591_v11 }
  0xaa   : > { %v628_v17 = vpack.c.bf16 %v627_v13, %v627_v13 }
  0xab   : > { %v635_v14 = vsel %vm630_vm2, %v629_v12, 0 }
  0xac   : > { %644 = vmatpush.bf16.xpose.msra.mxu3 %v635_v14 }
  0xad   : > { %v559_v15 = vpop.f32.mrf.mxu0  ;;  %v623_v24 = vpop.f32.mrf.mxu2 }
  0xae   : > { %v592_v16 = vpop.f32.mrf.mxu1  ;;  %v624_v26 = vadd.f32 %v1014_v23, %v623_v24 }
  0xb0   : > { %v663_v28 = vpack.c.bf16 %v624_v26, %v624_v26 }
  0xb2   : > { %v669_v30 = vsel %vm667_vm4, %v663_v28, 0 }
  0xb3   : > { %949 = vmatmul.msk.bf16.vlgmr.msra.gmra.mxu3 %vm630_vm2, %v628_v17  ;;  %678 = vmatpush.bf16.msrb.mxu0 %v669_v30 }
  0xb5   : > { %v625_v31 = vpop.f32.mrf.mxu2 }
 0x136   : > { %v646_v20 = vpop.f32.mrf.mxu3 }
 0x137   : > { %v651_v21 = vsel %vm650_vm3, %v646_v20, -inf }
 0x138   : > { %652 = vmax.xlane.f32.xlu0 %v651_v21 }
 0x13e   : > { %v648_v22 = vpop.f32.mrf.mxu3 }
 0x1ab   : > { %v653_v25 = vpop.xlane.xlu0 %652 }
 0x1ac   : > { %v654_v27 = vsub.f32 %v646_v20, %v653_v25 }
 0x1ae   : > { %v655_v29 = vmul.f32 1.442695, %v654_v27 }
 0x1b0   : > { %1015 = vpow2.f32 %v655_v29 }
 0x1b6   : > { %v1016_v32 = vpop.eup %1015 }
 0x1b7   : > { %v657_v33 = vsel %vm650_vm3, %v1016_v32, 0.0 }
 0x1b8   : > { %658 = vadd.xlane.f32.xlu0 %v657_v33 }
 0x22b   : > { %v659_v35 = vpop.xlane.xlu0 %658 }
 0x22c   : > { %1017 = vrcp.f32 %v659_v35 }
 0x232   : > { %v1018_v36 = vpop.eup %1017 }
 0x233   : > { %v661_v37 = vmul.f32 %v1018_v36, %v1016_v32 }
 0x235   : > { %v662_v38 = vpack.c.bf16 %v661_v37, %v661_v37 }
 0x237   : > { %950 = vmatmul.msk.bf16.vlgmr.msrb.gmra.mxu0 %vm650_vm3, %v662_v38 }
 0x2b4   : > { %v680_v39 = vpop.f32.mrf.mxu0 }
 0x2b5   : > { %v685_v40 = vpack.c.bf16 %v680_v39, %v680_v39 }
 0x2b7   : > { %955 = vmatmul.msk.bf16.vlgmr.msrb.gmra.mxu1 %vm630_vm2, %v685_v40 }
 0x2bc   : > { %v682_v41 = vpop.f32.mrf.mxu0 }
 0x334   : > { %v706_v43 = vpop.f32.mrf.mxu1 }
 0x335   : > { %v710_v44 = vadd.f32 %v706_v43, %v684_v42 }
 0x337   : > { %711 = vst.msk [vmem:[#allocation2] sm:$0xff] %vm544_vm1, %v710_v44 }
 0x338   : > { %715 = sbr.rel (%p956_p8) target bundleno = 1107 (0x453), region = 72 }
 0x33c   : > { %v708_v45 = vpop.f32.mrf.mxu1 }
 0x33d   : > { %v1019_v47 = vld [vmem:[%s1261_s8] ss:$0 sm:$0xff]  ;;  %v1067_v53 = vmov 32.0   ;;  %vm765_vm9 = vcmask 257024  }
 0x33e   : > { %v716_v46 = vld [vmem:[#allocation2] sm:$0xff]  ;;  %1022 = vrcp.f32 %v1067_v53 }
 0x33f   : > { %v722_v48 = vld [vmem:[%s1167_s28] sm:$0xf]  ;;  %v721_v49 = vadd.f32 %v1019_v47, %v716_v46 }
 0x340   : > { %v723_v50 = vunpack.c.l.bf16 %v722_v48  ;;  %v1020_v10 = vld [vmem:[%s1262_s9] ss:$0 sm:$0xff] }
 0x341   : > { %v1021_v12 = vld [vmem:[%s1280_s25] ss:$0 sm:$0xff] }
 0x342   : > { %v724_v51 = vadd.f32 %v723_v50, %v721_v49 }
 0x344   : > { %v725_v52 = vsel %vm544_vm1, %v724_v51, 0.0  ;;  %v1023_v54 = vpop.eup %1022 }
 0x345   : > { %726 = vadd.xlane.f32.xlu0 %v725_v52  ;;  %v729_v55 = vmul.f32 32.0, %v1023_v54  ;;  %vm733_vm5 = vweird.f32 %v1023_v54 }
 0x347   : > { %v730_v56 = vsub.f32 1.0, %v729_v55 }
 0x349   : > { %v731_v57 = vmul.f32 %v1023_v54, %v730_v56 }
 0x34b   : > { %v732_v58 = vadd.f32 %v1023_v54, %v731_v57 }
 0x34d   : > { %v734_v59 = vsel %vm733_vm5, %v1023_v54, %v732_v58 }
 0x3b8   : > { %v727_v60 = vpop.xlane.xlu0 %726 }
 0x3b9   : > { %v735_v61 = vmul.f32 %v734_v59, %v727_v60 }
 0x3bb   : > { %v736_v62 = vsub.f32 %v724_v51, %v735_v61 }
 0x3bd   : > { %v737_v63 = vmul.f32 %v736_v62, %v736_v62 }
 0x3bf   : > { %v738_v0 = vsel %vm544_vm1, %v737_v63, 0.0 }
 0x3c0   : > { %739 = vadd.xlane.f32.xlu0 %v738_v0 }
 0x433   : > { %v740_v1 = vpop.xlane.xlu0 %739 }
 0x434   : > { %v741_v2 = vmul.f32 %v740_v1, %v734_v59 }
 0x436   : > { %v742_v3 = vadd.f32 1e-12, %v741_v2 }
 0x438   : > { %1024 = vrsqrt.f32 %v742_v3  ;;  %vm749_vm7 = vweird.f32 %v742_v3 }
 0x43e   : > { %v1025_v4 = vpop.eup %1024 }
 0x43f   : > { %v744_v5 = vmul.f32 %v1025_v4, %v742_v3  ;;  %vm750_vm6 = vweird.f32 %v1025_v4 }
 0x440   : > { %vm751_vm8 = vmor %vm749_vm7, %vm750_vm6 }
 0x441   : > { %v745_v6 = vmul.f32 %v1025_v4, %v744_v5 }
 0x443   : > { %v746_v7 = vmul.f32 0.5, %v745_v6 }
 0x445   : > { %v747_v8 = vsub.f32 1.5, %v746_v7 }
 0x447   : > { %v748_v9 = vmul.f32 %v1025_v4, %v747_v8 }
 0x449   : > { %v752_v11 = vsel %vm751_vm8, %v1025_v4, %v748_v9 }
 0x44a   : > { %v753_v13 = vmul.f32 %v752_v11, %v736_v62 }
 0x44c   : > { %v758_v14 = vmul.f32 %v1020_v10, %v753_v13 }
 0x44e   : > { %v763_v15 = vadd.f32 %v1021_v12, %v758_v14 }
 0x450   : > { %v764_v16 = vpack.c.bf16 %v763_v15, %v763_v15 }
 0x452   : > { %766 = vst.msk [vmem:[%s1197_s2] sm:$0xf] %vm765_vm9, %v764_v16 }
 0x453 PF: > { %s1281_s28 = sld [smem:[#allocation5_spill]] }
 0x454   : > { %s1282_s17 = sld [smem:[#allocation3_spill]] }
 0x455   : > { %s1283_s18 = sld [smem:[#allocation4_spill]] }
 0x456   : > { %s1284_s19 = sld [smem:[#allocation6_spill]] }
 0x457   : > { %s1285_s20 = sld [smem:[#allocation7_spill]] }
 0x459   : > { %s21_s21 = sadd.s32 1, %s1281_s28  }
 0x45a   : > { %p18_p9 = scmp.ge.s32.totalorder %s21_s21, 6  }
 0x45c   :  { %20 = sbr.rel (!%p18_p9) target bundleno = 5 (0x5), region = 123 }

// kernel: bert_forward.8
= control target key start
LH: loop header
LB: loop body
LE: loop exit
PB: predicated region body
PF: predicated region fallthrough
CT: control target
= control target key end

     0   :  { %vm54_vm0 = vcmask 261120   ;;  %vm127_vm1 = vcmask 523264   ;;  %v273_v43 = vmov 32.0   ;;  %vm214_vm7 = vcmask 257024   ;;  %s361_s1 = inlined_call_operand.vmem [shape: bf16[32,64], index: 1, kind: input, shape index: {}]   ;;  %s362_s2 = inlined_call_operand.vmem [shape: f32[1,64], index: 2, kind: input, shape index: {}]   ;;  %s363_s0 = inlined_call_operand.vmem [shape: bf16[16,32], index: 0, kind: input, shape index: {}]   ;;  %s364_s4 = inlined_call_operand.vmem [shape: f32[1,32], index: 4, kind: input, shape index: {}]   ;;  %s365_s3 = inlined_call_operand.vmem [shape: bf16[64,32], index: 3, kind: input, shape index: {}]   ;;  %s366_s5 = inlined_call_operand.vmem [shape: f32[1,32], index: 5, kind: input, shape index: {}]   ;;  %s367_s6 = inlined_call_operand.vmem [shape: f32[1,32], index: 6, kind: input, shape index: {}]   ;;  %s368_s7 = inlined_call_operand.vmem [shape: bf16[16,32], index: 7, kind: output, shape index: {}]  }
   0x1   :  { %v253_v0 = vld [vmem:[%s361_s1 + $0x8] sm:$0xff]  ;;  %v252_v1 = vld [vmem:[%s361_s1] sm:$0xff]  ;;  %v257_v3 = vld [vmem:[%s365_s3 + $0x18] sm:$0xff] }
   0x2   :  { %64 = vmatpush.bf16.msra.mxu0 %v253_v0  ;;  %v251_v2 = vld [vmem:[%s363_s0] sm:$0xff]  ;;  %135 = vmatpush.bf16.msra.mxu1 %v257_v3  ;;  %v256_v4 = vld [vmem:[%s365_s3 + $0x10] sm:$0xff]  ;;  %v255_v5 = vld [vmem:[%s365_s3 + $0x8] sm:$0xff] }
   0x3   :  { %v259_v6 = vld [vmem:[%s362_s2] ss:$0 sm:$0xff] }
   0x4   :  { %v254_v7 = vld [vmem:[%s365_s3] sm:$0xff] }
   0x5   :  { %v27_v31 = vld [vmem:[%s363_s0] sm:$0xff]  }
   0x6   :  { %65 = vmatpush.bf16.msra.mxu0 %v252_v1  ;;  %136 = vmatpush.bf16.msra.mxu1 %v256_v4  ;;  %v260_v32 = vld [vmem:[%s364_s4] ss:$0 sm:$0xff]  ;;  %v145_v33 = vunpack.c.l.bf16 %v27_v31  ;;  %v146_v38 = vunpack.c.h.bf16 %v27_v31 }
   0x9   :  { %233 = vmatmul.msk.bf16.vlgmr.msra.gmra.mxu0 %vm54_vm0, %v251_v2 }
   0xa   :  { %137 = vmatpush.bf16.msra.mxu1 %v255_v5 }
   0xe   :  { %138 = vmatpush.bf16.msra.mxu1 %v254_v7 }
  0x86   :  { %v67_v8 = vpop.f32.mrf.mxu0 }
  0x87   :  { %v68_v9 = vadd.f32 %v259_v6, %v67_v8 }
  0x89   :  { %v72_v10 = vmul.f32 %v68_v9, %v68_v9 }
  0x8b   :  { %v74_v11 = vmul.f32 %v72_v10, %v68_v9  ;;  %v261_v10 = vld [vmem:[%s366_s5] ss:$0 sm:$0xff] }
  0x8d   :  { %v76_v12 = vmul.f32 0.044715, %v74_v11 }
  0x8e   :  { %v69_v13 = vpop.f32.mrf.mxu0 }
  0x8f   :  { %v78_v14 = vadd.f32 %v76_v12, %v68_v9  ;;  %v70_v15 = vadd.f32 %v259_v6, %v69_v13  ;;  %v262_v13 = vld [vmem:[%s367_s6] ss:$0 sm:$0xff] }
  0x91   :  { %v80_v16 = vmul.f32 0.7978846, %v78_v14  ;;  %v73_v17 = vmul.f32 %v70_v15, %v70_v15 }
  0x93   :  { %v75_v18 = vmul.f32 %v73_v17, %v70_v15  ;;  %263 = vtanh.f32 %v80_v16 }
  0x95   :  { %v77_v19 = vmul.f32 0.044715, %v75_v18 }
  0x97   :  { %v79_v20 = vadd.f32 %v77_v19, %v70_v15 }
  0x99   :  { %v81_v21 = vmul.f32 0.7978846, %v79_v20  ;;  %v264_v22 = vpop.eup %263 }
  0x9a   :  { %v84_v23 = vadd.f32 1.0, %v264_v22 }
  0x9b   :  { %265 = vtanh.f32 %v81_v21 }
  0x9c   :  { %v86_v26 = vmul.f32 0.5, %v84_v23  ;;  %267 = vrcp.f32 %v273_v43 }
  0x9e   :  { %v88_v28 = vmul.f32 %v86_v26, %v68_v9 }
  0xa1   :  { %v266_v24 = vpop.eup %265 }
  0xa2   :  { %v85_v25 = vadd.f32 1.0, %v266_v24  ;;  %v268_v44 = vpop.eup %267 }
  0xa3   :  { %v156_v45 = vmul.f32 32.0, %v268_v44  ;;  %vm160_vm2 = vweird.f32 %v268_v44 }
  0xa4   :  { %v87_v27 = vmul.f32 0.5, %v85_v25 }
  0xa5   :  { %v157_v46 = vsub.f32 1.0, %v156_v45 }
  0xa6   :  { %v89_v29 = vmul.f32 %v87_v27, %v70_v15 }
  0xa7   :  { %v158_v47 = vmul.f32 %v268_v44, %v157_v46 }
  0xa8   :  { %v90_v30 = vpack.c.bf16 %v89_v29, %v88_v28 }
  0xa9   :  { %v159_v48 = vadd.f32 %v268_v44, %v158_v47 }
  0xaa   :  { %250 = vmatmul.msk.bf16.vlgmr.msra.gmra.mxu1 %vm127_vm1, %v90_v30 }
  0xab   :  { %v161_v49 = vsel %vm160_vm2, %v268_v44, %v159_v48 }
 0x127   :  { %v140_v34 = vpop.f32.mrf.mxu1 }
 0x128   :  { %v141_v35 = vadd.f32 %v260_v32, %v140_v34 }
 0x12a   :  { %v147_v36 = vadd.f32 %v145_v33, %v141_v35 }
 0x12c   :  { %v149_v37 = vsel %vm54_vm0, %v147_v36, 0.0 }
 0x12d   :  { %150 = vadd.xlane.f32.xlu0 %v149_v37 }
 0x12f   :  { %v142_v39 = vpop.f32.mrf.mxu1 }
 0x130   :  { %v143_v40 = vadd.f32 %v260_v32, %v142_v39 }
 0x132   :  { %v148_v41 = vadd.f32 %v146_v38, %v143_v40 }
 0x134   :  { %v152_v42 = vsel %vm54_vm0, %v148_v41, 0.0 }
 0x135   :  { %153 = vadd.xlane.f32.xlu0 %v152_v42 }
 0x1a0   :  { %v151_v50 = vpop.xlane.xlu0 %150 }
 0x1a1   :  { %v162_v51 = vmul.f32 %v161_v49, %v151_v50 }
 0x1a3   :  { %v164_v52 = vsub.f32 %v147_v36, %v162_v51 }
 0x1a5   :  { %v166_v53 = vmul.f32 %v164_v52, %v164_v52 }
 0x1a7   :  { %v168_v54 = vsel %vm54_vm0, %v166_v53, 0.0 }
 0x1a8   :  { %169 = vadd.xlane.f32.xlu1 %v168_v54  ;;  %v154_v55 = vpop.xlane.xlu0 %153 }
 0x1a9   :  { %v163_v56 = vmul.f32 %v161_v49, %v154_v55 }
 0x1ab   :  { %v165_v57 = vsub.f32 %v148_v41, %v163_v56 }
 0x1ad   :  { %v167_v58 = vmul.f32 %v165_v57, %v165_v57 }
 0x1af   :  { %v171_v59 = vsel %vm54_vm0, %v167_v58, 0.0 }
 0x1b0   :  { %172 = vadd.xlane.f32.xlu1 %v171_v59 }
 0x21b   :  { %v170_v60 = vpop.xlane.xlu1 %169 }
 0x21c   :  { %v174_v61 = vmul.f32 %v170_v60, %v161_v49 }
 0x21e   :  { %v176_v62 = vadd.f32 1e-12, %v174_v61 }
 0x220   :  { %269 = vrsqrt.f32 %v176_v62  ;;  %vm184_vm4 = vweird.f32 %v176_v62 }
 0x223   :  { %v173_v63 = vpop.xlane.xlu1 %172 }
 0x224   :  { %v175_v0 = vmul.f32 %v173_v63, %v161_v49 }
 0x226   :  { %v270_v1 = vpop.eup %269  ;;  %v177_v2 = vadd.f32 1e-12, %v175_v0 }
 0x227   :  { %v179_v3 = vmul.f32 %v270_v1, %v176_v62  ;;  %vm185_vm3 = vweird.f32 %v270_v1 }
 0x228   :  { %271 = vrsqrt.f32 %v177_v2  ;;  %vm186_vm5 = vmor %vm184_vm4, %vm185_vm3  ;;  %vm194_vm8 = vweird.f32 %v177_v2 }
 0x229   :  { %v180_v4 = vmul.f32 %v270_v1, %v179_v3 }
 0x22b   :  { %v181_v5 = vmul.f32 0.5, %v180_v4 }
 0x22d   :  { %v182_v6 = vsub.f32 1.5, %v181_v5 }
 0x22e   :  { %v272_v7 = vpop.eup %271 }
 0x22f   :  { %v183_v8 = vmul.f32 %v270_v1, %v182_v6  ;;  %v189_v9 = vmul.f32 %v272_v7, %v177_v2  ;;  %vm195_vm6 = vweird.f32 %v272_v7 }
 0x230   :  { %vm196_vm9 = vmor %vm194_vm8, %vm195_vm6 }
 0x231   :  { %v187_v11 = vsel %vm186_vm5, %v270_v1, %v183_v8  ;;  %v190_v12 = vmul.f32 %v272_v7, %v189_v9 }
 0x232   :  { %v198_v14 = vmul.f32 %v187_v11, %v164_v52 }
 0x233   :  { %v191_v15 = vmul.f32 0.5, %v190_v12 }
 0x234   :  { %v204_v16 = vmul.f32 %v261_v10, %v198_v14 }
 0x235   :  { %v192_v17 = vsub.f32 1.5, %v191_v15 }
 0x236   :  { %v210_v18 = vadd.f32 %v262_v13, %v204_v16 }
 0x237   :  { %v193_v19 = vmul.f32 %v272_v7, %v192_v17 }
 0x238   :  { %v212_v20 = vpack.c.bf16 %v210_v18, %v210_v18 }
 0x239   :  { %v197_v21 = vsel %vm196_vm9, %v272_v7, %v193_v19 }
 0x23a   :  { %215 = vst.msk [vmem:[%s368_s7] sm:$0xf] %vm214_vm7, %v212_v20  ;;  %v199_v22 = vmul.f32 %v197_v21, %v165_v57 }
 0x23c   :  { %v205_v23 = vmul.f32 %v261_v10, %v199_v22 }
 0x23e   :  { %v211_v24 = vadd.f32 %v262_v13, %v205_v23 }
 0x240   :  { %v213_v25 = vpack.c.bf16 %v211_v24, %v211_v24 }
 0x242   :  { %216 = vst.msk [vmem:[%s368_s7 + $0x4] sm:$0xf] %vm214_vm7, %v213_v25 }

// kernel: bert_forward.11
= control target key start
LH: loop header
LB: loop body
LE: loop exit
PB: predicated region body
PF: predicated region fallthrough
CT: control target
= control target key end

     0   :  { %13 = vsyncpa [#allocation3], 0  ;;  %s319_s0 = inlined_call_operand.vmem [shape: bf16[2,32], index: 0, kind: input, shape index: {}]   ;;  %s320_s1 = inlined_call_operand.vmem [shape: f32[32,32], index: 1, kind: input, shape index: {}]   ;;  %s321_s2 = inlined_call_operand.vmem [shape: f32[1,32], index: 2, kind: input, shape index: {}]   ;;  %s322_s3 = inlined_call_operand.vmem [shape: f32[32,2], index: 3, kind: input, shape index: {}]   ;;  %s323_s4 = inlined_call_operand.vmem [shape: f32[1,2], index: 4, kind: input, shape index: {}]   ;;  %s324_s5 = inlined_call_operand.vmem [shape: s32[2,1], index: 5, kind: input, shape index: {}]   ;;  %s325_s6 = inlined_call_operand.hbm [shape: f32[1,1], index: 6, kind: output, shape index: {0}]   ;;  %s326_s7 = inlined_call_operand.hbm [shape: f32[2,2], index: 7, kind: output, shape index: {1}]  }
   0x1   :  { %v32_v0 = vld [vmem:[%s320_s1 + $0x18] sm:$0xff]  ;;  %v31_v1 = vld [vmem:[%s320_s1 + $0x10] sm:$0xff]  ;;  %v27_v2 = vld [vmem:[%s319_s0] sm:$0x1] }
   0x2   :  { %53 = vmatpush.msra.mxu0 %v32_v0  ;;  %v30_v3 = vld [vmem:[%s320_s1 + $0x8] sm:$0xff] }
   0x3   :  { %14 = vsyncpa [#allocation5], 0  ;;  %v29_v4 = vld [vmem:[%s320_s1] sm:$0xff]  ;;  %v28_v5 = vunpack.c.l.bf16 %v27_v2  ;;  %vm37_vm0 = vcmask 261120   ;;  %v65_v6 = vld [vmem:[%s322_s3 + $0x18] sm:$0xff]  ;;  %v228_v14 = vmov 0   ;;  %v106_v25 = vlaneseq }
   0x4   :  { %54 = vmatpush.msra.mxu0 %v31_v1  ;;  %85 = vmatpush.msra.mxu1 %v65_v6  ;;  %v64_v7 = vld [vmem:[%s322_s3 + $0x10] sm:$0xff]  ;;  %v63_v8 = vld [vmem:[%s322_s3 + $0x8] sm:$0xff]  ;;  %v62_v9 = vld [vmem:[%s322_s3] sm:$0xff]  ;;  %vm93_vm1 = vcmask 9216   ;;  %s148_s23 = sshll.u32 %s326_s7, 4  ;;  %vm118_vm3 = vcmask 1041408   ;;  %s149_s23 = int_to_ptr.hbm [resolvable:$true] %s148_s23 }
   0x5   :  { %v168_v10 = vld [vmem:[%s321_s2] ss:$0 sm:$0xff]  ;;  %167 = vset.pattern.permute.xlu0 %v228_v14  ;;  %v107_v26 = vand.u32 127, %v106_v25  ;;  %s230_s24 = smov [#allocation2]   ;;  %s137_s27 = sshll.u32 %s325_s6, 4  ;;  %vm127_vm4 = vcmask 0   ;;  %s138_s27 = int_to_ptr.hbm [resolvable:$true] %s137_s27 }
   0x6   :  { %55 = vmatpush.msra.mxu0 %v30_v3  ;;  %86 = vmatpush.msra.mxu1 %v64_v7  ;;  %v169_v15 = vld [vmem:[%s323_s4] ss:$0 sm:$0xff]  ;;  %s229_s4 = smov [#allocation4]   ;;  %s135_s25 = sshll.u32 %s230_s24, 4  ;;  %s136_s25 = int_to_ptr.vmem [resolvable:$true] %s135_s25 }
   0x7   :  { %v108_v19 = vld [vmem:[%s324_s5] sm:$0x3]  ;;  %s146_s21 = sshll.u32 %s229_s4, 4  ;;  %s147_s21 = int_to_ptr.vmem [resolvable:$true] %s146_s21 }
   0x8   :  { %56 = vmatpush.msra.mxu0 %v29_v4  ;;  %87 = vmatpush.msra.mxu1 %v63_v8 }
   0x9   :  { %162 = vmatmul.msk.f32.vlgmr.msra.gmra.mxu0 %vm37_vm0, %v28_v5 }
   0xa   :  { %88 = vmatpush.msra.mxu1 %v62_v9 }
  0x86   :  { %v58_v11 = vpop.f32.mrf.mxu0 }
  0x87   :  { %v59_v12 = vadd.f32 %v168_v10, %v58_v11 }
  0x89   :  { %170 = vtanh.f32 %v59_v12 }
  0x8f   :  { %v171_v13 = vpop.eup %170 }
  0x90   :  { %163 = vmatmul.msk.f32.vlgmr.msra.gmra.mxu1 %vm37_vm0, %v171_v13 }
 0x10d   :  { %v90_v16 = vpop.f32.mrf.mxu1 }
 0x10e   :  { %v91_v17 = vadd.f32 %v169_v15, %v90_v16 }
 0x110   :  { %v94_v18 = vsel %vm93_vm1, %v91_v17, -inf  ;;  %129 = vst.msk [vmem:[#allocation4] sm:$0x3] %vm93_vm1, %v91_v17 }
 0x111   :  { %95 = vmax.xlane.f32.xlu0 %v94_v18  ;;  %151 = dma.vmem_to_hbm [thread:$0]  %s147_s21, 32, %s149_s23, [#allocation5]  }
 0x125   :  { %110 = vperm.xlu0 %167, %v108_v19  }
 0x184   :  { %v96_v20 = vpop.xlane.xlu0 %95 }
 0x185   :  { %v97_v21 = vsub.f32 %v91_v17, %v96_v20 }
 0x187   :  { %v98_v22 = vmul.f32 1.442695, %v97_v21 }
 0x189   :  { %172 = vpow2.f32 %v98_v22 }
 0x18f   :  { %v173_v23 = vpop.eup %172 }
 0x190   :  { %v100_v24 = vsel %vm93_vm1, %v173_v23, 0.0 }
 0x191   :  { %101 = vadd.xlane.f32.xlu1 %v100_v24 }
 0x197   :  { %v111_v27 = vpop.permute.xlu0 %110 }
 0x198   :  { %vm112_vm2 = vcmp.eq.s32.totalorder %v107_v26, %v111_v27 }
 0x199   :  { %v113_v28 = vsel %vm112_vm2, %v91_v17, 0.0 }
 0x19a   :  { %v114_v29 = vsel %vm93_vm1, %v113_v28, 0.0 }
 0x19b   :  { %115 = vadd.xlane.f32.xlu1 %v114_v29 }
 0x204   :  { %v102_v30 = vpop.xlane.xlu1 %101 }
 0x205   :  { %174 = vlog2.f32 %v102_v30 }
 0x20b   :  { %v175_v31 = vpop.eup %174 }
 0x20c   :  { %v104_v32 = vmul.f32 0.6931472, %v175_v31 }
 0x20e   :  { %v105_v33 = vadd.f32 %v104_v32, %v96_v20  ;;  %v116_v34 = vpop.xlane.xlu1 %115 }
 0x210   :  { %v117_v35 = vsub.f32 %v105_v33, %v116_v34 }
 0x212   :  { %v119_v36 = vsel %vm118_vm3, %v117_v35, 0.0 }
 0x213   :  { %v120_v37 = vrot.slane %v119_v36, 4 }
 0x215   :  { %v121_v38 = vadd.f32 %v120_v37, %v119_v36 }
 0x217   :  { %v122_v39 = vrot.slane %v121_v38, 2 }
 0x219   :  { %v123_v40 = vadd.f32 %v122_v39, %v121_v38 }
 0x21b   :  { %v124_v41 = vrot.slane %v123_v40, 1 }
 0x21d   :  { %v125_v42 = vadd.f32 %v124_v41, %v123_v40 }
 0x21f   :  { %v126_v43 = vmul.f32 0.5, %v125_v42 }
 0x221   :  { %128 = vst.msk [vmem:[#allocation2] sm:$0x1] %vm127_vm4, %v126_v43 }
 0x222   :  { %140 = dma.vmem_to_hbm [thread:$0]  %s136_s25, 16, %s138_s27, [#allocation3]  }
 0x223   :  { %224 = dma.done.wait [#allocation3], 16  }
 0x224   :  { %225 = vsyncadd [#allocation3], 4294967280 }
 0x225   :  { %226 = dma.done.wait [#allocation5], 32  }
 0x226   :  { %227 = vsyncadd [#allocation5], 4294967264 }
 0x227   :  { %160 = vsyncpa [#allocation3], 1 }
 0x228   :  { %161 = vsyncpa [#allocation5], 1 }

</bundles_post_ra>
